<compile_context>
chip_gen: v7x
topology: tpu7x:2x2x1
jax: 0.10.0
libtpu: 0.0.40
codegen_flags: <defaults>
</compile_context>

<pallas_src>
import math
import functools

import jax
import jax.numpy as jnp
from jax import lax
from jax.experimental import pallas as pl
from jax.experimental.pallas import tpu as pltpu

LANE = 128

PARAM_ORDER = (
    "wq", "wkv", "wo",
    "ln_lat_g", "ln_lat_b", "ln_in_g", "ln_in_b", "ln_mlp_g", "ln_mlp_b",
    "fc1_w", "fc1_b", "fc2_w", "fc2_b",
)


# ----------------------------------------------------------------------------
# helpers
# ----------------------------------------------------------------------------
def _round_up(n, m):
    return ((n + m - 1) // m) * m


def _pad_to(a, shape):
    pads = [(0, t - s) for s, t in zip(a.shape, shape)]
    if all(p == (0, 0) for p in pads):
        return a
    return jnp.pad(a, pads)


def _layer_norm(v, gamma, beta, c_true, eps=1e-5):
    """LayerNorm over a (possibly zero-padded) last axis, f32 statistics.

    Padded lanes of `v` are zero, so the sum-based mean is exact; the variance
    masks out padded lanes.  gamma/beta are zero on padded lanes, so padded
    outputs stay exactly zero."""
    c_pad = v.shape[-1]
    inv_c = 1.0 / c_true
    mu = jnp.sum(v, axis=-1, keepdims=True) * inv_c
    d = v - mu
    if c_pad == c_true:
        d2 = d * d
    else:
        lane = lax.broadcasted_iota(jnp.int32, (1, c_pad), 1)
        d2 = jnp.where(lane < c_true, d * d, 0.0)
    var = jnp.sum(d2, axis=-1, keepdims=True) * inv_c
    return d * lax.rsqrt(var + eps) * gamma + beta


def _gelu_exact(v):
    # PyTorch nn.GELU() default = exact (erf) formulation.
    return 0.5 * v * (1.0 + lax.erf(v * (1.0 / math.sqrt(2.0))))


# ----------------------------------------------------------------------------
# Pallas kernel: full CrossAttentionBlock forward for one batch element
# ----------------------------------------------------------------------------
def cross_attention_block_kernel(
    lat_ref, x_ref,
    wq_ref, wkv_ref, wo_ref,
    ln_lat_g_ref, ln_lat_b_ref,
    ln_in_g_ref, ln_in_b_ref,
    ln_mlp_g_ref, ln_mlp_b_ref,
    fc1_w_ref, fc1_b_ref, fc2_w_ref, fc2_b_ref,
    out_ref,
    *, clat, cin, nheads, dp, dpv,
):
    f32 = jnp.float32
    bf16 = jnp.bfloat16

    lat = lat_ref[...]                       # (Lq,  Clat_p) f32
    xin = x_ref[...]                         # (Lkv, Cin_p)  f32

    # ---- pre-LN (f32 stats), cast to bf16 for the MXU ------------------------
    lat_n = _layer_norm(lat, ln_lat_g_ref[...], ln_lat_b_ref[...], clat).astype(bf16)
    x_n = _layer_norm(xin, ln_in_g_ref[...], ln_in_b_ref[...], cin).astype(bf16)

    # ---- dense 2-D projections (1/sqrt(dqk) folded into W_Q; K|V fused) ------
    q2 = jnp.dot(lat_n, wq_ref[...], preferred_element_type=f32)     # (Lq,  H*dp)
    kv2 = jnp.dot(x_n, wkv_ref[...], preferred_element_type=f32)     # (Lkv, H*(dp+dpv))
    koff = nheads * dp

    # Head split: every head block is a full 128-lane tile -> aligned slices.
    q = jnp.stack([q2[:, h * dp:(h + 1) * dp] for h in range(nheads)],
                  axis=0).astype(bf16)                               # (H, Lq,  dp)
    k = jnp.stack([kv2[:, h * dp:(h + 1) * dp] for h in range(nheads)],
                  axis=0).astype(bf16)                               # (H, Lkv, dp)
    v = jnp.stack([kv2[:, koff + h * dpv:koff + (h + 1) * dpv]
                   for h in range(nheads)], axis=0).astype(bf16)     # (H, Lkv, dpv)

    # ---- attention: all heads batched, softmax in f32 -------------------------
    s = jnp.einsum("hqd,hkd->hqk", q, k, preferred_element_type=f32)  # (H, Lq, Lkv)
    s = s - jnp.max(s, axis=-1, keepdims=True)
    p = jnp.exp(s)
    p = p * pl.reciprocal(jnp.sum(p, axis=-1, keepdims=True), approx=True)

    o = jnp.einsum("hqk,hkd->hqd", p.astype(bf16), v,
                   preferred_element_type=f32)                        # (H, Lq, dpv)

    # ---- output projection: one contraction over (heads, dv) ------------------
    o2 = jnp.concatenate([o[h] for h in range(nheads)], axis=-1).astype(bf16)
    attn_out = jnp.dot(o2, wo_ref[...], preferred_element_type=f32)   # (Lq, Clat_p)

    # ---- residual + MLP (pre-LN, exact GELU, residual) ------------------------
    lat1 = lat + attn_out
    lat1_n = _layer_norm(lat1, ln_mlp_g_ref[...], ln_mlp_b_ref[...], clat).astype(bf16)
    h1 = jnp.dot(lat1_n, fc1_w_ref[...], preferred_element_type=f32) + fc1_b_ref[...]
    h1 = _gelu_exact(h1).astype(bf16)
    h2 = jnp.dot(h1, fc2_w_ref[...], preferred_element_type=f32) + fc2_b_ref[...]

    out_ref[...] = (lat1 + h2).astype(out_ref.dtype)


# ----------------------------------------------------------------------------
# One-time parameter preparation (hoisted out of the per-call wrapper)
# ----------------------------------------------------------------------------
def prepare_params(params, *, nxheads):
    """Restructure module params for the kernel (run once, reuse every call).

    Linear weights are expected as (in_features, out_features)."""
    Clat, Cqk = params["wq"].shape
    Cin = params["wk"].shape[0]
    Cv = params["wv"].shape[1]
    Hid = params["fc1_w"].shape[1]
    dqk = Cqk // nxheads
    dv = Cv // nxheads
    dp = _round_up(dqk, LANE)
    dpv = _round_up(dv, LANE)
    clat_p = _round_up(Clat, LANE)
    cin_p = _round_up(Cin, LANE)
    hid_p = _round_up(Hid, LANE)
    scale = 1.0 / math.sqrt(dqk)
    bf16 = jnp.bfloat16

    def head_pack(w, d_head, d_pad):
        # (C, H*d_head) -> (C, H*d_pad): each head's output block zero-padded to
        # a full 128-lane tile so in-kernel head slices are lane-tile aligned.
        c = w.shape[0]
        w3 = _pad_to(w.reshape(c, nxheads, d_head), (c, nxheads, d_pad))
        return w3.reshape(c, nxheads * d_pad)

    wq = head_pack(params["wq"] * scale, dqk, dp)          # scale folded into W_Q
    wq = _pad_to(wq, (clat_p, nxheads * dp)).astype(bf16)

    wk = head_pack(params["wk"], dqk, dp)
    wv = head_pack(params["wv"], dv, dpv)
    wkv = jnp.concatenate([wk, wv], axis=1)                # fused K|V projection
    wkv = _pad_to(wkv, (cin_p, nxheads * dp + nxheads * dpv)).astype(bf16)

    wo = params["wo"].reshape(nxheads, dv, Clat)           # rows are head-major
    wo = _pad_to(wo, (nxheads, dpv, clat_p)).reshape(nxheads * dpv, clat_p)
    wo = wo.astype(bf16)

    return {
        "wq": wq, "wkv": wkv, "wo": wo,
        "ln_lat_g": _pad_to(params["ln_lat_g"], (1, clat_p)),
        "ln_lat_b": _pad_to(params["ln_lat_b"], (1, clat_p)),
        "ln_in_g": _pad_to(params["ln_in_g"], (1, cin_p)),
        "ln_in_b": _pad_to(params["ln_in_b"], (1, cin_p)),
        "ln_mlp_g": _pad_to(params["ln_mlp_g"], (1, clat_p)),
        "ln_mlp_b": _pad_to(params["ln_mlp_b"], (1, clat_p)),
        "fc1_w": _pad_to(params["fc1_w"], (clat_p, hid_p)).astype(bf16),
        "fc1_b": _pad_to(params["fc1_b"], (1, hid_p)),
        "fc2_w": _pad_to(params["fc2_w"], (hid_p, clat_p)).astype(bf16),
        "fc2_b": _pad_to(params["fc2_b"], (1, clat_p)),
        "meta": dict(clat=Clat, cin=Cin, clat_p=clat_p, cin_p=cin_p,
                     nheads=nxheads, dp=dp, dpv=dpv),
    }


# ----------------------------------------------------------------------------
# Forward wrapper: pad inputs lane-dense, launch a parallel batch grid.
# ----------------------------------------------------------------------------
def cross_attention_block(latents, x, prep):
    meta = prep["meta"]
    B, Lq, Clat = latents.shape
    _, Lkv, Cin = x.shape
    assert Clat == meta["clat"] and Cin == meta["cin"]
    clat_p, cin_p = meta["clat_p"], meta["cin_p"]

    lat_p = _pad_to(latents, (B, Lq, clat_p))
    x_p = _pad_to(x, (B, Lkv, cin_p))
    param_list = [prep[k] for k in PARAM_ORDER]

    def const_spec(p):
        nd = p.ndim
        return pl.BlockSpec(p.shape, lambda b, _nd=nd: (0,) * _nd)

    kernel = functools.partial(
        cross_attention_block_kernel,
        clat=Clat, cin=Cin, nheads=meta["nheads"],
        dp=meta["dp"], dpv=meta["dpv"])

    out_p = pl.pallas_call(
        kernel,
        out_shape=jax.ShapeDtypeStruct((B, Lq, clat_p), latents.dtype),
        grid=(B,),
        in_specs=[
            pl.BlockSpec((None, Lq, clat_p), lambda b: (b, 0, 0)),
            pl.BlockSpec((None, Lkv, cin_p), lambda b: (b, 0, 0)),
        ] + [const_spec(p) for p in param_list],
        out_specs=pl.BlockSpec((None, Lq, clat_p), lambda b: (b, 0, 0)),
        compiler_params=pltpu.CompilerParams(dimension_semantics=("parallel",)),
    )(lat_p, x_p, *param_list)

    return out_p[:, :, :Clat]


# ----------------------------------------------------------------------------
# Pure-JAX reference (mirrors the PyTorch forward exactly, f32)
# ----------------------------------------------------------------------------
def reference(latents, x, params, *, nxheads):
    def ln(v, g, b):
        mu = jnp.mean(v, axis=-1, keepdims=True)
        var = jnp.mean((v - mu) ** 2, axis=-1, keepdims=True)
        return (v - mu) / jnp.sqrt(var + 1e-5) * g + b

    B, Lq, Clat = latents.shape
    _, Lkv, Cin = x.shape
    qk_channels = params["wq"].shape[1]
    v_channels = params["wv"].shape[1]
    dqk = qk_channels // nxheads
    dv = v_channels // nxheads

    lat_n = ln(latents, params["ln_lat_g"][0], params["ln_lat_b"][0])
    x_n = ln(x, params["ln_in_g"][0], params["ln_in_b"][0])

    Q = (lat_n @ params["wq"]).reshape(B, Lq, nxheads, dqk).transpose(0, 2, 1, 3)
    K = (x_n @ params["wk"]).reshape(B, Lkv, nxheads, dqk).transpose(0, 2, 1, 3)
    V = (x_n @ params["wv"]).reshape(B, Lkv, nxheads, dv).transpose(0, 2, 1, 3)

    attn = jnp.einsum("bhqd,bhkd->bhqk", Q, K) / math.sqrt(dqk)
    attn = jax.nn.softmax(attn, axis=-1)
    out = jnp.einsum("bhqk,bhkd->bhqd", attn, V)
    out = out.transpose(0, 2, 1, 3).reshape(B, Lq, v_channels)
    out = out @ params["wo"]

    lat1 = latents + out
    lat1_n = ln(lat1, params["ln_mlp_g"][0], params["ln_mlp_b"][0])
    h = lat1_n @ params["fc1_w"] + params["fc1_b"][0]
    h = jax.nn.gelu(h, approximate=False)
    h = h @ params["fc2_w"] + params["fc2_b"][0]
    return lat1 + h


# ----------------------------------------------------------------------------
if __name__ == "__main__":
    # Small shapes consistent with the module
    B, Lq, Lkv = 2, 8, 16
    latent_channels, in_channels, nxheads = 32, 16, 2
    qk_channels = latent_channels
    v_channels = qk_channels

    key = jax.random.PRNGKey(0)
    keys = jax.random.split(key, 10)

    def w(k, shape, scale=0.1):
        return (scale * jax.random.normal(k, shape)).astype(jnp.float32)

    params = {
        # linear weights pre-transposed to (in_features, out_features)
        "wq": w(keys[0], (latent_channels, qk_channels)),
        "wk": w(keys[1], (in_channels, qk_channels)),
        "wv": w(keys[2], (in_channels, v_channels)),
        "wo": w(keys[3], (v_channels, latent_channels)),
        "fc1_w": w(keys[4], (latent_channels, 4 * latent_channels)),
        "fc1_b": w(keys[5], (1, 4 * latent_channels)),
        "fc2_w": w(keys[6], (4 * latent_channels, latent_channels)),
        "fc2_b": w(keys[7], (1, latent_channels)),
        # layer norms init like PyTorch (gamma=1, beta=0), kept as (1, C)
        "ln_lat_g": jnp.ones((1, latent_channels), jnp.float32),
        "ln_lat_b": jnp.zeros((1, latent_channels), jnp.float32),
        "ln_in_g": jnp.ones((1, in_channels), jnp.float32),
        "ln_in_b": jnp.zeros((1, in_channels), jnp.float32),
        "ln_mlp_g": jnp.ones((1, latent_channels), jnp.float32),
        "ln_mlp_b": jnp.zeros((1, latent_channels), jnp.float32),
    }

    latents = jax.random.normal(keys[8], (B, Lq, latent_channels), jnp.float32)
    x = jax.random.normal(keys[9], (B, Lkv, in_channels), jnp.float32)

    prep = prepare_params(params, nxheads=nxheads)   # one-time weight prep
    out = cross_attention_block(latents, x, prep)
    out = jax.block_until_ready(out)

    ref = reference(latents, x, params, nxheads=nxheads)
    assert out.shape == (B, Lq, latent_channels)
    # tolerance accounts for bf16 matmul operands (f32 accumulation) and the
    # approximate (EUP) reciprocal in the softmax; f32 reference.
    assert jnp.allclose(out, ref, atol=2e-2, rtol=2e-2), "mismatch vs reference"

    print("KERNEL_OK")
</pallas_src>

<mosaic_0001>
module attributes {stable_mosaic.version = 11 : i64} {
  func.func @cross_attention_block_kernel(%arg0: i32, %arg1: memref<1x8x128xf32, #tpu.memory_space<vmem>>, %arg2: memref<1x16x128xf32, #tpu.memory_space<vmem>>, %arg3: memref<128x256xbf16, #tpu.memory_space<vmem>>, %arg4: memref<128x512xbf16, #tpu.memory_space<vmem>>, %arg5: memref<256x128xbf16, #tpu.memory_space<vmem>>, %arg6: memref<1x128xf32, #tpu.memory_space<vmem>>, %arg7: memref<1x128xf32, #tpu.memory_space<vmem>>, %arg8: memref<1x128xf32, #tpu.memory_space<vmem>>, %arg9: memref<1x128xf32, #tpu.memory_space<vmem>>, %arg10: memref<1x128xf32, #tpu.memory_space<vmem>>, %arg11: memref<1x128xf32, #tpu.memory_space<vmem>>, %arg12: memref<128x128xbf16, #tpu.memory_space<vmem>>, %arg13: memref<1x128xf32, #tpu.memory_space<vmem>>, %arg14: memref<128x128xbf16, #tpu.memory_space<vmem>>, %arg15: memref<1x128xf32, #tpu.memory_space<vmem>>, %arg16: memref<1x8x128xf32, #tpu.memory_space<vmem>>) attributes {dimension_semantics = [#tpu.dimension_semantics<parallel>], iteration_bounds = array<i64: 2>, scalar_prefetch = 0 : i64, scratch_operands = 0 : i64, tpu.core_type = #tpu.core_type<tc>, window_params = [{transform_indices = @transform_0, window_bounds = array<i64: 1, 8, 128>}, {transform_indices = @transform_1, window_bounds = array<i64: 1, 16, 128>}, {pipeline_mode = #tpu.pipeline_mode<synchronous>, transform_indices = @transform_2, window_bounds = array<i64: 128, 256>}, {pipeline_mode = #tpu.pipeline_mode<synchronous>, transform_indices = @transform_3, window_bounds = array<i64: 128, 512>}, {pipeline_mode = #tpu.pipeline_mode<synchronous>, transform_indices = @transform_4, window_bounds = array<i64: 256, 128>}, {pipeline_mode = #tpu.pipeline_mode<synchronous>, transform_indices = @transform_5, window_bounds = array<i64: 1, 128>}, {pipeline_mode = #tpu.pipeline_mode<synchronous>, transform_indices = @transform_6, window_bounds = array<i64: 1, 128>}, {pipeline_mode = #tpu.pipeline_mode<synchronous>, transform_indices = @transform_7, window_bounds = array<i64: 1, 128>}, {pipeline_mode = #tpu.pipeline_mode<synchronous>, transform_indices = @transform_8, window_bounds = array<i64: 1, 128>}, {pipeline_mode = #tpu.pipeline_mode<synchronous>, transform_indices = @transform_9, window_bounds = array<i64: 1, 128>}, {pipeline_mode = #tpu.pipeline_mode<synchronous>, transform_indices = @transform_10, window_bounds = array<i64: 1, 128>}, {pipeline_mode = #tpu.pipeline_mode<synchronous>, transform_indices = @transform_11, window_bounds = array<i64: 128, 128>}, {pipeline_mode = #tpu.pipeline_mode<synchronous>, transform_indices = @transform_12, window_bounds = array<i64: 1, 128>}, {pipeline_mode = #tpu.pipeline_mode<synchronous>, transform_indices = @transform_13, window_bounds = array<i64: 128, 128>}, {pipeline_mode = #tpu.pipeline_mode<synchronous>, transform_indices = @transform_14, window_bounds = array<i64: 1, 128>}, {transform_indices = @transform_15, window_bounds = array<i64: 1, 8, 128>}]} {
    %c0 = arith.constant 0 : index
    %c0_0 = arith.constant 0 : index
    %c0_1 = arith.constant 0 : index
    %0 = vector.load %arg1[%c0, %c0_0, %c0_1] : memref<1x8x128xf32, #tpu.memory_space<vmem>>, vector<1x8x128xf32>
    %1 = vector.shape_cast %0 : vector<1x8x128xf32> to vector<8x128xf32>
    %c0_2 = arith.constant 0 : index
    %c0_3 = arith.constant 0 : index
    %c0_4 = arith.constant 0 : index
    %2 = vector.load %arg2[%c0_2, %c0_3, %c0_4] : memref<1x16x128xf32, #tpu.memory_space<vmem>>, vector<1x16x128xf32>
    %3 = vector.shape_cast %2 : vector<1x16x128xf32> to vector<16x128xf32>
    %c0_5 = arith.constant 0 : index
    %c0_6 = arith.constant 0 : index
    %4 = vector.load %arg6[%c0_5, %c0_6] : memref<1x128xf32, #tpu.memory_space<vmem>>, vector<1x128xf32>
    %c0_7 = arith.constant 0 : index
    %c0_8 = arith.constant 0 : index
    %5 = vector.load %arg7[%c0_7, %c0_8] : memref<1x128xf32, #tpu.memory_space<vmem>>, vector<1x128xf32>
    %cst = arith.constant dense<0.000000e+00> : vector<8xf32>
    %6 = vector.multi_reduction <add>, %1, %cst [1] : vector<8x128xf32> to vector<8xf32>
    %7 = vector.shape_cast %6 : vector<8xf32> to vector<8x1xf32>
    %cst_9 = arith.constant 3.125000e-02 : f32
    %8 = vector.broadcast %cst_9 : f32 to vector<8x1xf32>
    %9 = arith.mulf %7, %8 : vector<8x1xf32>
    %10 = vector.broadcast %9 : vector<8x1xf32> to vector<8x128xf32>
    %11 = arith.subf %1, %10 : vector<8x128xf32>
    %12 = tpu.iota {dimensions = array<i32: 1>} : vector<1x128xi32>
    %c32_i32 = arith.constant 32 : i32
    %13 = vector.broadcast %c32_i32 : i32 to vector<1x128xi32>
    %14 = arith.cmpi slt, %12, %13 : vector<1x128xi32>
    %15 = arith.mulf %11, %11 : vector<8x128xf32>
    %cst_10 = arith.constant 0.000000e+00 : f32
    %16 = vector.shape_cast %14 : vector<1x128xi1> to vector<1x128xi1>
    %17 = vector.broadcast %16 : vector<1x128xi1> to vector<8x128xi1>
    %18 = vector.broadcast %cst_10 : f32 to vector<8x128xf32>
    %19 = arith.select %17, %15, %18 : vector<8x128xi1>, vector<8x128xf32>
    %cst_11 = arith.constant dense<0.000000e+00> : vector<8xf32>
    %20 = vector.multi_reduction <add>, %19, %cst_11 [1] : vector<8x128xf32> to vector<8xf32>
    %21 = vector.shape_cast %20 : vector<8xf32> to vector<8x1xf32>
    %cst_12 = arith.constant 3.125000e-02 : f32
    %22 = vector.broadcast %cst_12 : f32 to vector<8x1xf32>
    %23 = arith.mulf %21, %22 : vector<8x1xf32>
    %cst_13 = arith.constant 9.99999974E-6 : f32
    %24 = vector.broadcast %cst_13 : f32 to vector<8x1xf32>
    %25 = arith.addf %23, %24 : vector<8x1xf32>
    %26 = math.rsqrt %25 : vector<8x1xf32>
    %27 = vector.broadcast %26 : vector<8x1xf32> to vector<8x128xf32>
    %28 = arith.mulf %11, %27 : vector<8x128xf32>
    %29 = vector.broadcast %4 : vector<1x128xf32> to vector<8x128xf32>
    %30 = arith.mulf %28, %29 : vector<8x128xf32>
    %31 = vector.broadcast %5 : vector<1x128xf32> to vector<8x128xf32>
    %32 = arith.addf %30, %31 : vector<8x128xf32>
    %33 = arith.truncf %32 : vector<8x128xf32> to vector<8x128xbf16>
    %c0_14 = arith.constant 0 : index
    %c0_15 = arith.constant 0 : index
    %34 = vector.load %arg8[%c0_14, %c0_15] : memref<1x128xf32, #tpu.memory_space<vmem>>, vector<1x128xf32>
    %c0_16 = arith.constant 0 : index
    %c0_17 = arith.constant 0 : index
    %35 = vector.load %arg9[%c0_16, %c0_17] : memref<1x128xf32, #tpu.memory_space<vmem>>, vector<1x128xf32>
    %cst_18 = arith.constant dense<0.000000e+00> : vector<16xf32>
    %36 = vector.multi_reduction <add>, %3, %cst_18 [1] : vector<16x128xf32> to vector<16xf32>
    %37 = vector.shape_cast %36 : vector<16xf32> to vector<16x1xf32>
    %cst_19 = arith.constant 6.250000e-02 : f32
    %38 = vector.broadcast %cst_19 : f32 to vector<16x1xf32>
    %39 = arith.mulf %37, %38 : vector<16x1xf32>
    %40 = vector.broadcast %39 : vector<16x1xf32> to vector<16x128xf32>
    %41 = arith.subf %3, %40 : vector<16x128xf32>
    %42 = tpu.iota {dimensions = array<i32: 1>} : vector<1x128xi32>
    %c16_i32 = arith.constant 16 : i32
    %43 = vector.broadcast %c16_i32 : i32 to vector<1x128xi32>
    %44 = arith.cmpi slt, %42, %43 : vector<1x128xi32>
    %45 = arith.mulf %41, %41 : vector<16x128xf32>
    %cst_20 = arith.constant 0.000000e+00 : f32
    %46 = vector.shape_cast %44 : vector<1x128xi1> to vector<1x128xi1>
    %47 = vector.broadcast %46 : vector<1x128xi1> to vector<16x128xi1>
    %48 = vector.broadcast %cst_20 : f32 to vector<16x128xf32>
    %49 = arith.select %47, %45, %48 : vector<16x128xi1>, vector<16x128xf32>
    %cst_21 = arith.constant dense<0.000000e+00> : vector<16xf32>
    %50 = vector.multi_reduction <add>, %49, %cst_21 [1] : vector<16x128xf32> to vector<16xf32>
    %51 = vector.shape_cast %50 : vector<16xf32> to vector<16x1xf32>
    %cst_22 = arith.constant 6.250000e-02 : f32
    %52 = vector.broadcast %cst_22 : f32 to vector<16x1xf32>
    %53 = arith.mulf %51, %52 : vector<16x1xf32>
    %cst_23 = arith.constant 9.99999974E-6 : f32
    %54 = vector.broadcast %cst_23 : f32 to vector<16x1xf32>
    %55 = arith.addf %53, %54 : vector<16x1xf32>
    %56 = math.rsqrt %55 : vector<16x1xf32>
    %57 = vector.broadcast %56 : vector<16x1xf32> to vector<16x128xf32>
    %58 = arith.mulf %41, %57 : vector<16x128xf32>
    %59 = vector.broadcast %34 : vector<1x128xf32> to vector<16x128xf32>
    %60 = arith.mulf %58, %59 : vector<16x128xf32>
    %61 = vector.broadcast %35 : vector<1x128xf32> to vector<16x128xf32>
    %62 = arith.addf %60, %61 : vector<16x128xf32>
    %63 = arith.truncf %62 : vector<16x128xf32> to vector<16x128xbf16>
    %c0_24 = arith.constant 0 : index
    %c0_25 = arith.constant 0 : index
    %64 = vector.load %arg3[%c0_24, %c0_25] : memref<128x256xbf16, #tpu.memory_space<vmem>>, vector<128x256xbf16>
    %cst_26 = arith.constant dense<0.000000e+00> : vector<8x256xf32>
    %65 = tpu.matmul %33, %64, %cst_26 {dimension_numbers = #tpu.dot_dimension_numbers<[1], [0], [0], [1], [0, 0, 1, 1], [], []>} : vector<8x128xbf16>, vector<128x256xbf16>, vector<8x256xf32> -> vector<8x256xf32>
    %c0_27 = arith.constant 0 : index
    %c0_28 = arith.constant 0 : index
    %66 = vector.load %arg4[%c0_27, %c0_28] : memref<128x512xbf16, #tpu.memory_space<vmem>>, vector<128x512xbf16>
    %cst_29 = arith.constant dense<0.000000e+00> : vector<16x512xf32>
    %67 = tpu.matmul %63, %66, %cst_29 {dimension_numbers = #tpu.dot_dimension_numbers<[1], [0], [0], [1], [0, 0, 1, 1], [], []>} : vector<16x128xbf16>, vector<128x512xbf16>, vector<16x512xf32> -> vector<16x512xf32>
    %68 = vector.extract_strided_slice %65 {offsets = [0, 0], sizes = [8, 128], strides = [1, 1]} : vector<8x256xf32> to vector<8x128xf32>
    %69 = vector.extract_strided_slice %65 {offsets = [0, 128], sizes = [8, 128], strides = [1, 1]} : vector<8x256xf32> to vector<8x128xf32>
    %70 = vector.shape_cast %68 : vector<8x128xf32> to vector<1x8x128xf32>
    %71 = vector.shape_cast %69 : vector<8x128xf32> to vector<1x8x128xf32>
    %72 = tpu.concatenate %70, %71 in 0 : vector<1x8x128xf32>, vector<1x8x128xf32> -> vector<2x8x128xf32>
    %73 = arith.truncf %72 : vector<2x8x128xf32> to vector<2x8x128xbf16>
    %74 = vector.extract_strided_slice %67 {offsets = [0, 0], sizes = [16, 128], strides = [1, 1]} : vector<16x512xf32> to vector<16x128xf32>
    %75 = vector.extract_strided_slice %67 {offsets = [0, 128], sizes = [16, 128], strides = [1, 1]} : vector<16x512xf32> to vector<16x128xf32>
    %76 = vector.shape_cast %74 : vector<16x128xf32> to vector<1x16x128xf32>
    %77 = vector.shape_cast %75 : vector<16x128xf32> to vector<1x16x128xf32>
    %78 = tpu.concatenate %76, %77 in 0 : vector<1x16x128xf32>, vector<1x16x128xf32> -> vector<2x16x128xf32>
    %79 = arith.truncf %78 : vector<2x16x128xf32> to vector<2x16x128xbf16>
    %80 = vector.extract_strided_slice %67 {offsets = [0, 256], sizes = [16, 128], strides = [1, 1]} : vector<16x512xf32> to vector<16x128xf32>
    %81 = vector.extract_strided_slice %67 {offsets = [0, 384], sizes = [16, 128], strides = [1, 1]} : vector<16x512xf32> to vector<16x128xf32>
    %82 = vector.shape_cast %80 : vector<16x128xf32> to vector<1x16x128xf32>
    %83 = vector.shape_cast %81 : vector<16x128xf32> to vector<1x16x128xf32>
    %84 = tpu.concatenate %82, %83 in 0 : vector<1x16x128xf32>, vector<1x16x128xf32> -> vector<2x16x128xf32>
    %85 = arith.truncf %84 : vector<2x16x128xf32> to vector<2x16x128xbf16>
    "tpu.trace_start"() <{level = 10 : i32, message = "hqd,hkd->hqk"}> : () -> ()
    %cst_30 = arith.constant dense<0.000000e+00> : vector<2x8x16xf32>
    %86 = tpu.matmul %73, %79, %cst_30 {dimension_numbers = #tpu.dot_dimension_numbers<[2], [2], [1], [1], [0, 0, 0, 1, 1, 1], [0], [0]>} : vector<2x8x128xbf16>, vector<2x16x128xbf16>, vector<2x8x16xf32> -> vector<2x8x16xf32>
    "tpu.trace_stop"() : () -> ()
    %cst_31 = arith.constant dense<0xFF800000> : vector<2x8xf32>
    %87 = vector.multi_reduction <maximumf>, %86, %cst_31 [2] : vector<2x8x16xf32> to vector<2x8xf32>
    %88 = vector.shape_cast %87 : vector<2x8xf32> to vector<2x8x1xf32>
    %89 = vector.broadcast %88 : vector<2x8x1xf32> to vector<2x8x16xf32>
    %90 = arith.subf %86, %89 : vector<2x8x16xf32>
    %91 = math.exp %90 : vector<2x8x16xf32>
    %cst_32 = arith.constant dense<0.000000e+00> : vector<2x8xf32>
    %92 = vector.multi_reduction <add>, %91, %cst_32 [2] : vector<2x8x16xf32> to vector<2x8xf32>
    %93 = vector.shape_cast %92 : vector<2x8xf32> to vector<2x8x1xf32>
    %94 = tpu.reciprocal %93 {approx = true} : vector<2x8x1xf32> -> vector<2x8x1xf32>
    %95 = vector.broadcast %94 : vector<2x8x1xf32> to vector<2x8x16xf32>
    %96 = arith.mulf %91, %95 : vector<2x8x16xf32>
    %97 = arith.truncf %96 : vector<2x8x16xf32> to vector<2x8x16xbf16>
    "tpu.trace_start"() <{level = 10 : i32, message = "hqk,hkd->hqd"}> : () -> ()
    %cst_33 = arith.constant dense<0.000000e+00> : vector<2x8x128xf32>
    %98 = tpu.matmul %97, %85, %cst_33 {dimension_numbers = #tpu.dot_dimension_numbers<[2], [1], [1], [2], [0, 0, 0, 1, 1, 2], [0], [0]>} : vector<2x8x16xbf16>, vector<2x16x128xbf16>, vector<2x8x128xf32> -> vector<2x8x128xf32>
    "tpu.trace_stop"() : () -> ()
    %99 = vector.extract_strided_slice %98 {offsets = [0, 0, 0], sizes = [1, 8, 128], strides = [1, 1, 1]} : vector<2x8x128xf32> to vector<1x8x128xf32>
    %100 = vector.shape_cast %99 : vector<1x8x128xf32> to vector<8x128xf32>
    %101 = vector.extract_strided_slice %98 {offsets = [1, 0, 0], sizes = [1, 8, 128], strides = [1, 1, 1]} : vector<2x8x128xf32> to vector<1x8x128xf32>
    %102 = vector.shape_cast %101 : vector<1x8x128xf32> to vector<8x128xf32>
    %103 = tpu.concatenate %100, %102 in 1 : vector<8x128xf32>, vector<8x128xf32> -> vector<8x256xf32>
    %104 = arith.truncf %103 : vector<8x256xf32> to vector<8x256xbf16>
    %c0_34 = arith.constant 0 : index
    %c0_35 = arith.constant 0 : index
    %105 = vector.load %arg5[%c0_34, %c0_35] : memref<256x128xbf16, #tpu.memory_space<vmem>>, vector<256x128xbf16>
    %cst_36 = arith.constant dense<0.000000e+00> : vector<8x128xf32>
    %106 = tpu.matmul %104, %105, %cst_36 {dimension_numbers = #tpu.dot_dimension_numbers<[1], [0], [0], [1], [0, 0, 1, 1], [], []>} : vector<8x256xbf16>, vector<256x128xbf16>, vector<8x128xf32> -> vector<8x128xf32>
    %107 = arith.addf %1, %106 : vector<8x128xf32>
    %c0_37 = arith.constant 0 : index
    %c0_38 = arith.constant 0 : index
    %108 = vector.load %arg10[%c0_37, %c0_38] : memref<1x128xf32, #tpu.memory_space<vmem>>, vector<1x128xf32>
    %c0_39 = arith.constant 0 : index
    %c0_40 = arith.constant 0 : index
    %109 = vector.load %arg11[%c0_39, %c0_40] : memref<1x128xf32, #tpu.memory_space<vmem>>, vector<1x128xf32>
    %cst_41 = arith.constant dense<0.000000e+00> : vector<8xf32>
    %110 = vector.multi_reduction <add>, %107, %cst_41 [1] : vector<8x128xf32> to vector<8xf32>
    %111 = vector.shape_cast %110 : vector<8xf32> to vector<8x1xf32>
    %cst_42 = arith.constant 3.125000e-02 : f32
    %112 = vector.broadcast %cst_42 : f32 to vector<8x1xf32>
    %113 = arith.mulf %111, %112 : vector<8x1xf32>
    %114 = vector.broadcast %113 : vector<8x1xf32> to vector<8x128xf32>
    %115 = arith.subf %107, %114 : vector<8x128xf32>
    %116 = tpu.iota {dimensions = array<i32: 1>} : vector<1x128xi32>
    %c32_i32_43 = arith.constant 32 : i32
    %117 = vector.broadcast %c32_i32_43 : i32 to vector<1x128xi32>
    %118 = arith.cmpi slt, %116, %117 : vector<1x128xi32>
    %119 = arith.mulf %115, %115 : vector<8x128xf32>
    %cst_44 = arith.constant 0.000000e+00 : f32
    %120 = vector.shape_cast %118 : vector<1x128xi1> to vector<1x128xi1>
    %121 = vector.broadcast %120 : vector<1x128xi1> to vector<8x128xi1>
    %122 = vector.broadcast %cst_44 : f32 to vector<8x128xf32>
    %123 = arith.select %121, %119, %122 : vector<8x128xi1>, vector<8x128xf32>
    %cst_45 = arith.constant dense<0.000000e+00> : vector<8xf32>
    %124 = vector.multi_reduction <add>, %123, %cst_45 [1] : vector<8x128xf32> to vector<8xf32>
    %125 = vector.shape_cast %124 : vector<8xf32> to vector<8x1xf32>
    %cst_46 = arith.constant 3.125000e-02 : f32
    %126 = vector.broadcast %cst_46 : f32 to vector<8x1xf32>
    %127 = arith.mulf %125, %126 : vector<8x1xf32>
    %cst_47 = arith.constant 9.99999974E-6 : f32
    %128 = vector.broadcast %cst_47 : f32 to vector<8x1xf32>
    %129 = arith.addf %127, %128 : vector<8x1xf32>
    %130 = math.rsqrt %129 : vector<8x1xf32>
    %131 = vector.broadcast %130 : vector<8x1xf32> to vector<8x128xf32>
    %132 = arith.mulf %115, %131 : vector<8x128xf32>
    %133 = vector.broadcast %108 : vector<1x128xf32> to vector<8x128xf32>
    %134 = arith.mulf %132, %133 : vector<8x128xf32>
    %135 = vector.broadcast %109 : vector<1x128xf32> to vector<8x128xf32>
    %136 = arith.addf %134, %135 : vector<8x128xf32>
    %137 = arith.truncf %136 : vector<8x128xf32> to vector<8x128xbf16>
    %c0_48 = arith.constant 0 : index
    %c0_49 = arith.constant 0 : index
    %138 = vector.load %arg12[%c0_48, %c0_49] : memref<128x128xbf16, #tpu.memory_space<vmem>>, vector<128x128xbf16>
    %cst_50 = arith.constant dense<0.000000e+00> : vector<8x128xf32>
    %139 = tpu.matmul %137, %138, %cst_50 {dimension_numbers = #tpu.dot_dimension_numbers<[1], [0], [0], [1], [0, 0, 1, 1], [], []>} : vector<8x128xbf16>, vector<128x128xbf16>, vector<8x128xf32> -> vector<8x128xf32>
    %c0_51 = arith.constant 0 : index
    %c0_52 = arith.constant 0 : index
    %140 = vector.load %arg13[%c0_51, %c0_52] : memref<1x128xf32, #tpu.memory_space<vmem>>, vector<1x128xf32>
    %141 = vector.broadcast %140 : vector<1x128xf32> to vector<8x128xf32>
    %142 = arith.addf %139, %141 : vector<8x128xf32>
    %cst_53 = arith.constant 5.000000e-01 : f32
    %143 = vector.broadcast %cst_53 : f32 to vector<8x128xf32>
    %144 = arith.mulf %143, %142 : vector<8x128xf32>
    %cst_54 = arith.constant 0.707106769 : f32
    %145 = vector.broadcast %cst_54 : f32 to vector<8x128xf32>
    %146 = arith.mulf %142, %145 : vector<8x128xf32>
    %147 = math.erf %146 : vector<8x128xf32>
    %cst_55 = arith.constant 1.000000e+00 : f32
    %148 = vector.broadcast %cst_55 : f32 to vector<8x128xf32>
    %149 = arith.addf %148, %147 : vector<8x128xf32>
    %150 = arith.mulf %144, %149 : vector<8x128xf32>
    %151 = arith.truncf %150 : vector<8x128xf32> to vector<8x128xbf16>
    %c0_56 = arith.constant 0 : index
    %c0_57 = arith.constant 0 : index
    %152 = vector.load %arg14[%c0_56, %c0_57] : memref<128x128xbf16, #tpu.memory_space<vmem>>, vector<128x128xbf16>
    %cst_58 = arith.constant dense<0.000000e+00> : vector<8x128xf32>
    %153 = tpu.matmul %151, %152, %cst_58 {dimension_numbers = #tpu.dot_dimension_numbers<[1], [0], [0], [1], [0, 0, 1, 1], [], []>} : vector<8x128xbf16>, vector<128x128xbf16>, vector<8x128xf32> -> vector<8x128xf32>
    %c0_59 = arith.constant 0 : index
    %c0_60 = arith.constant 0 : index
    %154 = vector.load %arg15[%c0_59, %c0_60] : memref<1x128xf32, #tpu.memory_space<vmem>>, vector<1x128xf32>
    %155 = vector.broadcast %154 : vector<1x128xf32> to vector<8x128xf32>
    %156 = arith.addf %153, %155 : vector<8x128xf32>
    %157 = arith.addf %107, %156 : vector<8x128xf32>
    %c0_61 = arith.constant 0 : index
    %c0_62 = arith.constant 0 : index
    %c0_63 = arith.constant 0 : index
    %158 = vector.load %arg16[%c0_61, %c0_62, %c0_63] : memref<1x8x128xf32, #tpu.memory_space<vmem>>, vector<1x8x128xf32>
    %159 = vector.shape_cast %158 : vector<1x8x128xf32> to vector<8x128xf32>
    %160 = vector.shape_cast %157 : vector<8x128xf32> to vector<1x8x128xf32>
    tpu.vector_store %arg16[%c0_61, %c0_62, %c0_63], %160 {strides = array<i32>} : memref<1x8x128xf32, #tpu.memory_space<vmem>>, vector<1x8x128xf32>,
    return
  }
  func.func @transform_0(%arg0: i32) -> (i32, i32, i32) {
    %c0_i32 = arith.constant 0 : i32
    %c0_i32_0 = arith.constant 0 : i32
    %c0_i32_1 = arith.constant 0 : i32
    return %arg0, %c0_i32, %c0_i32_0 : i32, i32, i32
  }
  func.func @transform_1(%arg0: i32) -> (i32, i32, i32) {
    %c0_i32 = arith.constant 0 : i32
    %c0_i32_0 = arith.constant 0 : i32
    %c0_i32_1 = arith.constant 0 : i32
    return %arg0, %c0_i32, %c0_i32_0 : i32, i32, i32
  }
  func.func @transform_2(%arg0: i32) -> (i32, i32) {
    %c0_i32 = arith.constant 0 : i32
    %c0_i32_0 = arith.constant 0 : i32
    %c0_i32_1 = arith.constant 0 : i32
    return %c0_i32, %c0_i32_0 : i32, i32
  }
  func.func @transform_3(%arg0: i32) -> (i32, i32) {
    %c0_i32 = arith.constant 0 : i32
    %c0_i32_0 = arith.constant 0 : i32
    %c0_i32_1 = arith.constant 0 : i32
    return %c0_i32, %c0_i32_0 : i32, i32
  }
  func.func @transform_4(%arg0: i32) -> (i32, i32) {
    %c0_i32 = arith.constant 0 : i32
    %c0_i32_0 = arith.constant 0 : i32
    %c0_i32_1 = arith.constant 0 : i32
    return %c0_i32, %c0_i32_0 : i32, i32
  }
  func.func @transform_5(%arg0: i32) -> (i32, i32) {
    %c0_i32 = arith.constant 0 : i32
    %c0_i32_0 = arith.constant 0 : i32
    %c0_i32_1 = arith.constant 0 : i32
    return %c0_i32, %c0_i32_0 : i32, i32
  }
  func.func @transform_6(%arg0: i32) -> (i32, i32) {
    %c0_i32 = arith.constant 0 : i32
    %c0_i32_0 = arith.constant 0 : i32
    %c0_i32_1 = arith.constant 0 : i32
    return %c0_i32, %c0_i32_0 : i32, i32
  }
  func.func @transform_7(%arg0: i32) -> (i32, i32) {
    %c0_i32 = arith.constant 0 : i32
    %c0_i32_0 = arith.constant 0 : i32
    %c0_i32_1 = arith.constant 0 : i32
    return %c0_i32, %c0_i32_0 : i32, i32
  }
  func.func @transform_8(%arg0: i32) -> (i32, i32) {
    %c0_i32 = arith.constant 0 : i32
    %c0_i32_0 = arith.constant 0 : i32
    %c0_i32_1 = arith.constant 0 : i32
    return %c0_i32, %c0_i32_0 : i32, i32
  }
  func.func @transform_9(%arg0: i32) -> (i32, i32) {
    %c0_i32 = arith.constant 0 : i32
    %c0_i32_0 = arith.constant 0 : i32
    %c0_i32_1 = arith.constant 0 : i32
    return %c0_i32, %c0_i32_0 : i32, i32
  }
  func.func @transform_10(%arg0: i32) -> (i32, i32) {
    %c0_i32 = arith.constant 0 : i32
    %c0_i32_0 = arith.constant 0 : i32
    %c0_i32_1 = arith.constant 0 : i32
    return %c0_i32, %c0_i32_0 : i32, i32
  }
  func.func @transform_11(%arg0: i32) -> (i32, i32) {
    %c0_i32 = arith.constant 0 : i32
    %c0_i32_0 = arith.constant 0 : i32
    %c0_i32_1 = arith.constant 0 : i32
    return %c0_i32, %c0_i32_0 : i32, i32
  }
  func.func @transform_12(%arg0: i32) -> (i32, i32) {
    %c0_i32 = arith.constant 0 : i32
    %c0_i32_0 = arith.constant 0 : i32
    %c0_i32_1 = arith.constant 0 : i32
    return %c0_i32, %c0_i32_0 : i32, i32
  }
  func.func @transform_13(%arg0: i32) -> (i32, i32) {
    %c0_i32 = arith.constant 0 : i32
    %c0_i32_0 = arith.constant 0 : i32
    %c0_i32_1 = arith.constant 0 : i32
    return %c0_i32, %c0_i32_0 : i32, i32
  }
  func.func @transform_14(%arg0: i32) -> (i32, i32) {
    %c0_i32 = arith.constant 0 : i32
    %c0_i32_0 = arith.constant 0 : i32
    %c0_i32_1 = arith.constant 0 : i32
    return %c0_i32, %c0_i32_0 : i32, i32
  }
  func.func @transform_15(%arg0: i32) -> (i32, i32, i32) {
    %c0_i32 = arith.constant 0 : i32
    %c0_i32_0 = arith.constant 0 : i32
    %c0_i32_1 = arith.constant 0 : i32
    return %arg0, %c0_i32, %c0_i32_0 : i32, i32, i32
  }
}

</mosaic_0001>

<bundles_post_ra>
// kernel: tpu_custom_call.1
= control target key start
LH: loop header
LB: loop body
LE: loop exit
PB: predicated region body
PF: predicated region fallthrough
CT: control target
= control target key end

     0   :  { %s3203_s0 = inlined_call_operand.hbm [shape: f32[2,8,128], index: 0, kind: input, shape index: {}]   ;;  %s3204_s1 = inlined_call_operand.hbm [shape: f32[2,16,128], index: 1, kind: input, shape index: {}]   ;;  %s3205_s2 = inlined_call_operand.hbm [shape: bf16[128,256], index: 2, kind: input, shape index: {}]   ;;  %s3206_s3 = inlined_call_operand.hbm [shape: bf16[128,512], index: 3, kind: input, shape index: {}]   ;;  %s3207_s4 = inlined_call_operand.hbm [shape: bf16[256,128], index: 4, kind: input, shape index: {}]   ;;  %s3208_s5 = inlined_call_operand.vmem [shape: f32[1,128], index: 5, kind: input, shape index: {}]   ;;  %s3209_s6 = inlined_call_operand.vmem [shape: f32[1,128], index: 6, kind: input, shape index: {}]   ;;  %s3210_s7 = inlined_call_operand.vmem [shape: f32[1,128], index: 7, kind: input, shape index: {}]   ;;  %s3211_s8 = inlined_call_operand.vmem [shape: f32[1,128], index: 8, kind: input, shape index: {}]   ;;  %s3212_s9 = inlined_call_operand.vmem [shape: f32[1,128], index: 9, kind: input, shape index: {}]   ;;  %s3213_s10 = inlined_call_operand.vmem [shape: f32[1,128], index: 10, kind: input, shape index: {}]   ;;  %s3214_s11 = inlined_call_operand.hbm [shape: bf16[128,128], index: 11, kind: input, shape index: {}]   ;;  %s3215_s12 = inlined_call_operand.vmem [shape: f32[1,128], index: 12, kind: input, shape index: {}]   ;;  %s3216_s13 = inlined_call_operand.hbm [shape: bf16[128,128], index: 13, kind: input, shape index: {}]   ;;  %s3217_s14 = inlined_call_operand.vmem [shape: f32[1,128], index: 14, kind: input, shape index: {}]   ;;  %s3218_s15 = inlined_call_operand.hbm [shape: f32[2,8,128], index: 15, kind: output, shape index: {}]  }
   0x1   :  { %3225 = sst [smem:[#allocation21_spill]] %s3203_s0 }
   0x2   :  { %3226 = sst [smem:[#allocation22_spill]] %s3205_s2 }
   0x3   :  { %3227 = sst [smem:[#allocation23_spill]] %s3206_s3 }
   0x4   :  { %3228 = sst [smem:[#allocation24_spill]] %s3207_s4 }
   0x5   :  { %3229 = sst [smem:[#allocation25_spill]] %s3209_s6 }
   0x6   :  { %3230 = sst [smem:[#allocation26_spill]] %s3212_s9 }
   0x7   :  { %3231 = sst [smem:[#allocation27_spill]] %s3213_s10 }
   0x8   :  { %3232 = sst [smem:[#allocation28_spill]] %s3214_s11 }
   0x9   :  { %3233 = sst [smem:[#allocation29_spill]] %s3215_s12 }
   0xa   :  { %3234 = sst [smem:[#allocation30_spill]] %s3217_s14 }
   0xb   :  { %3235 = sst [smem:[#allocation31_spill]] %s3218_s15 }
   0xc   :  { %20 = vsyncpa [#allocation3], 0 }
   0xd   :  { %22 = vsyncpa [#allocation3 + $0x1], 0 }
   0xe   :  { %23 = vsyncpa [#allocation6], 0 }
   0xf   :  { %25 = vsyncpa [#allocation6 + $0x1], 0 }
  0x10   :  { %26 = vsyncpa [#allocation9], 0 }
  0x11   :  { %27 = vsyncpa [#allocation12], 0 }
  0x12   :  { %28 = vsyncpa [#allocation4], 0 }
  0x13   :  { %30 = vsyncpa [#allocation4 + $0x1], 0  ;;  %s2745_s18 = smov 0   ;;  %s2747_s19 = smov 0  }
  0x14   :  { %s2749_s20 = smov 0   ;;  %s2751_s21 = smov 0  }
  0x15 LB: > { %s2648_s22 = smov [#allocation7]   ;;  %s2766_s24 = sadd.s32 4294967295, %s2646_s21   ;;  %s2646_s21 = sphi %s2751_s21, %s3271_s21   ;;  %s2642_s20 = sphi %s2749_s20, %s3270_s20   ;;  %s2638_s19 = sphi %s2747_s19, %s3269_s19   ;;  %s2634_s18 = sphi %s2745_s18, %s3268_s18  }
  0x16   : > { %s404_s23 = sshll.u32 %s2648_s22, 4  ;;  %p1903_p0 = scmp.ge.s32.totalorder %s2646_s21, 1  ;;  %s2771_s23 = int_to_ptr.vmem [resolvable:$true] %s404_s23 }
  0x17   : > { %p3222_p1 = scmp.eq.s32.totalorder %s2766_s24, 0  ;;  %p392_p2 = scmp.lt.s32.totalorder %s2646_s21, 3 }
  0x18   : > { %s2649_s26 = smov [#allocation8]   ;;  %s3238_s2 = sld [smem:[#allocation22_spill]] }
  0x19   : > { %p2773_p3 = pnand %p1903_p0, %p392_p2  ;;  %s417_s27 = sshll.u32 %s2649_s26, 4  ;;  %s2786_s27 = int_to_ptr.vmem [resolvable:$true] %s417_s27 }
  0x1b   : > { %s3236_s25 = scalar_select %p2773_p3, 1, 0 }
  0x1c   : > { %p2157_p5 = pneg %p2773_p3 }
  0x1e   : > { %p2782_p6 = pnand %p2157_p5, %p3222_p1  ;;  %s2364_s16 = scalar_lea.hbm %s3238_s2, 2048 }
  0x1f   : > { %p2365_p7 = scmp.ne.s32.totalorder %s3238_s2, %s2364_s16  ;;  %p2371_p11 = scmp.lt.u32.totalorder %s2364_s16, %s3238_s2 }
  0x20   : > { %p2796_p8 = pneg %p2782_p6 }
  0x22   : > { %p2367_p9 = pnand %p2796_p8, %p2365_p7 }
  0x24   : > { %p2368_p10 = pneg %p2367_p9 }
  0x26   : > { %p2373_p12 = pnand %p2371_p11, %p2368_p10 }
  0x28   : > { %2376 = shalt.err (!%p2373_p12)
}
  0x29   : > { %s2377_s29 = scalar_lea.vmem %s2771_s23, 2048  ;;  %p2385_p5 = scmp.lt.s32.totalorder %s2771_s23, %s2771_s23 }
  0x2a   : > { %p2378_p13 = scmp.ne.s32.totalorder %s2771_s23, %s2377_s29  ;;  %p2386_p4 = scmp.lt.s32.totalorder %s2377_s29, %s2377_s29 }
  0x2c   : > { %p2380_p0 = pnand %p2378_p13, %p2796_p8  ;;  %p2387_p7 = por %p2386_p4, %p2385_p5 }
  0x2e   : > { %p2381_p2 = pneg %p2380_p0 }
  0x30   : > { %p2388_p9 = pnand %p2387_p7, %p2381_p2 }
  0x32   : > { %2391 = shalt.err (!%p2388_p9)
}
  0x33   : > { %s3220_s30 = smov 128   ;;  %s3221_s14 = smov 8  }
  0x34   : > { %2160 = dma.hbm_to_vmem [thread:$0]  (!%p2782_p6), %s3238_s2, 2048, %s2771_s23, [#allocation6], %s3220_s30, %s3220_s30, %s3221_s14  }
  0x35   : > { %s3240_s3 = sld [smem:[#allocation23_spill]] }
  0x3b   : > { %s2392_s29 = scalar_lea.hbm %s3240_s3, 4096 }
  0x3c   : > { %p2393_p4 = scmp.ne.s32.totalorder %s3240_s3, %s2392_s29  ;;  %p2399_p12 = scmp.lt.u32.totalorder %s2392_s29, %s3240_s3 }
  0x3e   : > { %p2395_p10 = pnand %p2393_p4, %p2796_p8 }
  0x40   : > { %p2396_p11 = pneg %p2395_p10 }
  0x42   : > { %p2401_p13 = pnand %p2399_p12, %p2396_p11 }
  0x44   : > { %2404 = shalt.err (!%p2401_p13)
}
  0x45   : > { %s2405_s23 = scalar_lea.vmem %s2786_s27, 4096  ;;  %p2413_p7 = scmp.lt.s32.totalorder %s2786_s27, %s2786_s27 }
  0x46   : > { %p2406_p0 = scmp.ne.s32.totalorder %s2786_s27, %s2405_s23  ;;  %p2414_p9 = scmp.lt.s32.totalorder %s2405_s23, %s2405_s23 }
  0x48   : > { %p2408_p2 = pnand %p2406_p0, %p2796_p8  ;;  %p2415_p4 = por %p2414_p9, %p2413_p7 }
  0x4a   : > { %p2409_p5 = pneg %p2408_p2 }
  0x4c   : > { %p2416_p10 = pnand %p2415_p4, %p2409_p5 }
  0x4e   : > { %2419 = shalt.err (!%p2416_p10)
}
  0x4f   : > { %s2652_s10 = smov 256   ;;  %s2653_s6 = smov 16  }
  0x50   : > { %2163 = dma.hbm_to_vmem [thread:$0]  (!%p2782_p6), %s3240_s3, 4096, %s2786_s27, [#allocation9], %s2652_s10, %s2652_s10, %s2653_s6  }
  0x51   : > { %s2654_s16 = smov [#allocation11]   ;;  %s2655_s22 = smov [#allocation10]  }
  0x52   : > { %s461_s17 = sshll.u32 %s2654_s16, 4  ;;  %s430_s26 = sshll.u32 %s2655_s22, 4  ;;  %s462_s17 = int_to_ptr.vmem [resolvable:$true] %s461_s17  ;;  %s2843_s26 = int_to_ptr.vmem [resolvable:$true] %s430_s26 }
  0x53   : > { %s3241_s11 = sld [smem:[#allocation28_spill]] }
  0x59   : > { %s2420_s30 = scalar_lea.hbm %s3241_s11, 1024 }
  0x5a   : > { %p2421_p11 = scmp.ne.s32.totalorder %s3241_s11, %s2420_s30  ;;  %p2427_p0 = scmp.lt.u32.totalorder %s2420_s30, %s3241_s11 }
  0x5c   : > { %p2423_p12 = pnand %p2421_p11, %p2796_p8 }
  0x5e   : > { %p2424_p13 = pneg %p2423_p12 }
  0x60   : > { %p2429_p2 = pnand %p2427_p0, %p2424_p13 }
  0x62   : > { %2432 = shalt.err (!%p2429_p2)
}
  0x63   : > { %s2433_s10 = scalar_lea.vmem %s462_s17, 1024  ;;  %p2441_p4 = scmp.lt.s32.totalorder %s462_s17, %s462_s17 }
  0x64   : > { %p2434_p5 = scmp.ne.s32.totalorder %s462_s17, %s2433_s10  ;;  %p2442_p10 = scmp.lt.s32.totalorder %s2433_s10, %s2433_s10 }
  0x66   : > { %p2436_p7 = pnand %p2434_p5, %p2796_p8  ;;  %p2443_p1 = por %p2442_p10, %p2441_p4 }
  0x68   : > { %p2437_p9 = pneg %p2436_p7 }
  0x6a   : > { %p2444_p3 = pnand %p2443_p1, %p2437_p9 }
  0x6c   : > { %2447 = shalt.err (!%p2444_p3)
}
  0x6d   : > { %s2656_s2 = smov 64   ;;  %s2657_s14 = smov 4  }
  0x6e   : > { %2169 = dma.hbm_to_vmem [thread:$0]  (!%p2782_p6), %s3241_s11, 1024, %s462_s17, [#allocation12], %s2656_s2, %s2656_s2, %s2657_s14  }
  0x6f   : > { %s3242_s4 = sld [smem:[#allocation24_spill]] }
  0x75   : > { %s2448_s22 = scalar_lea.hbm %s3242_s4, 2048 }
  0x76   : > { %p2449_p1 = scmp.ne.s32.totalorder %s3242_s4, %s2448_s22  ;;  %p2455_p12 = scmp.lt.u32.totalorder %s2448_s22, %s3242_s4 }
  0x78   : > { %p2451_p3 = pnand %p2449_p1, %p2796_p8 }
  0x7a   : > { %p2452_p11 = pneg %p2451_p3 }
  0x7c   : > { %p2457_p13 = pnand %p2455_p12, %p2452_p11 }
  0x7e   : > { %2460 = shalt.err (!%p2457_p13)
}
  0x7f   : > { %s2461_s17 = scalar_lea.vmem %s2843_s26, 2048  ;;  %p2469_p7 = scmp.lt.s32.totalorder %s2843_s26, %s2843_s26 }
  0x80   : > { %p2462_p0 = scmp.ne.s32.totalorder %s2843_s26, %s2461_s17  ;;  %p2470_p9 = scmp.lt.s32.totalorder %s2461_s17, %s2461_s17 }
  0x82   : > { %p2464_p2 = pnand %p2462_p0, %p2796_p8  ;;  %p2471_p4 = por %p2470_p9, %p2469_p7 }
  0x84   : > { %p2465_p5 = pneg %p2464_p2 }
  0x86   : > { %p2472_p10 = pnand %p2471_p4, %p2465_p5 }
  0x88   : > { %2475 = shalt.err (!%p2472_p10)
}
  0x89   : > { %2166 = dma.hbm_to_vmem [thread:$0]  (!%p2782_p6), %s3242_s4, 2048, %s2843_s26, [#allocation9], %s2656_s2, %s2656_s2, %s2657_s14  }
  0x8a   : > { %s2658_s6 = smov [#allocation13]   ;;  %s2476_s29 = scalar_lea.hbm %s3216_s13, 1024 }
  0x8b   : > { %s477_s12 = sshll.u32 %s2658_s6, 4  ;;  %p2477_p1 = scmp.ne.s32.totalorder %s3216_s13, %s2476_s29  ;;  %s478_s12 = int_to_ptr.vmem [resolvable:$true] %s477_s12 }
  0x8c   : > { %p2483_p12 = scmp.lt.u32.totalorder %s2476_s29, %s3216_s13 }
  0x8d   : > { %p2479_p3 = pnand %p2477_p1, %p2796_p8 }
  0x8f   : > { %p2480_p11 = pneg %p2479_p3 }
  0x91   : > { %p2485_p13 = pnand %p2483_p12, %p2480_p11 }
  0x93   : > { %2488 = shalt.err (!%p2485_p13)
}
  0x94   : > { %s2489_s26 = scalar_lea.vmem %s478_s12, 1024  ;;  %p2497_p7 = scmp.lt.s32.totalorder %s478_s12, %s478_s12 }
  0x95   : > { %p2490_p0 = scmp.ne.s32.totalorder %s478_s12, %s2489_s26  ;;  %p2498_p9 = scmp.lt.s32.totalorder %s2489_s26, %s2489_s26 }
  0x97   : > { %p2492_p2 = pnand %p2490_p0, %p2796_p8  ;;  %p2499_p4 = por %p2498_p9, %p2497_p7 }
  0x99   : > { %p2493_p5 = pneg %p2492_p2 }
  0x9b   : > { %p2500_p10 = pnand %p2499_p4, %p2493_p5 }
  0x9d   : > { %2503 = shalt.err (!%p2500_p10)
}
  0x9e   : > { %2172 = dma.hbm_to_vmem [thread:$0]  (!%p2782_p6), %s3216_s13, 1024, %s478_s12, [#allocation12], %s2656_s2, %s2656_s2, %s2657_s14  }
  0x9f   : > { %s1902_s15 = sadd.s32 4294967294, %s2646_s21   ;;  %s2915_s28 = sadd.s32 1, %s2646_s21  }
  0xa0   : > { %s43_s6 = sadd.s32 1, %s2642_s20  ;;  %s40_s16 = ssub.s32 %s2646_s21, %s2915_s28 }
  0xa1   : > { %p50_p8 = scmp.ne.s32.totalorder %s2642_s20, %s2638_s19  ;;  %p41_p1 = scmp.eq.s32.totalorder %s40_s16, 0 }
  0xa2   : > { %p51_p3 = scmp.eq.s32.totalorder %s2646_s21, 0  ;;  %p56_p11 = scmp.ne.s32.totalorder %s2638_s19, %s2634_s18 }
  0xa3   : > { %p379_p12 = scmp.eq.s32.totalorder %s2766_s24, 1  ;;  %p3243_p0 = scmp.eq.s32.totalorder %s2766_s24, 0 }
  0xa4   : > { %s2927_s22 = scalar_select %p41_p1, %s2642_s20, %s43_s6  }
  0xa5   : > { %p52_p13 = por %p51_p3, %p50_p8  ;;  %p2931_p2 = por %p3243_p0, %p56_p11 }
  0xa6   : > { %p2935_p6 = por %p379_p12, %p50_p8  ;;  %p385_p5 = scmp.eq.s32.totalorder %s1902_s15, 1 }
  0xa7   : > { %p2189_p7 = scmp.lt.s32.totalorder %s2646_s21, 2  ;;  %s2941_s14 = sand.u32 1, %s2642_s20  }
  0xa8   : > { %s3245_s2 = scalar_select %p2935_p6, 1, 0 }
  0xa9   : > { %p2943_p9 = por %p385_p5, %p56_p11  ;;  %s1910_s23 = sshll.u32 %s2941_s14, 3 }
  0xaa   : > { %s1911_s9 = sshll.u32 %s2646_s21, 7  ;;  %s3247_s0 = sld [smem:[#allocation21_spill]] }
  0xab   : > { %s3246_s12 = scalar_select %p2943_p9, 1, 0 }
  0xac   : > { %s498_s10 = scalar_lea.vmem [#allocation2], %s1910_s23  ;;  %p2954_p4 = pnand %p2189_p7, %p52_p13 }
  0xad   : > { %s505_s30 = sshll.u32 %s498_s10, 4  ;;  %s495_s16 = scalar_lea.sflag [#allocation3], %s2941_s14  ;;  %s2958_s30 = int_to_ptr.vmem [resolvable:$true] %s505_s30 }
  0xae   : > { %p2506_p8 = pneg %p2954_p4 }
  0xb0   : > { %s2952_s26 = scalar_lea.hbm %s3247_s0, %s1911_s9  ;;  %s2509_s27 = scalar_lea.hbm %s3247_s0, 256 }
  0xb1   : > { %s2504_s3 = scalar_lea.hbm %s2952_s26, 128  ;;  %p2510_p11 = scmp.lt.u32.totalorder %s2952_s26, %s3247_s0 }
  0xb2   : > { %p2505_p10 = scmp.ne.s32.totalorder %s2952_s26, %s2504_s3  ;;  %p2511_p12 = scmp.lt.u32.totalorder %s2509_s27, %s2504_s3 }
  0xb3   : > { %p2513_p0 = scmp.lt.u32.totalorder %s2504_s3, %s2952_s26 }
  0xb4   : > { %p2507_p1 = pnand %p2506_p8, %p2505_p10  ;;  %p2512_p13 = por %p2511_p12, %p2510_p11 }
  0xb6   : > { %p2508_p3 = pneg %p2507_p1  ;;  %p2514_p5 = por %p2513_p0, %p2512_p13 }
  0xb8   : > { %p2515_p7 = pnand %p2514_p5, %p2508_p3 }
  0xba   : > { %2518 = shalt.err (!%p2515_p7)
}
  0xbb   : > { %s2519_s6 = scalar_lea.vmem %s2958_s30, 128  ;;  %s2659_s23 = smov [#allocation2]  }
  0xbc   : > { %p2520_p10 = scmp.ne.s32.totalorder %s2958_s30, %s2519_s6  ;;  %s2524_s9 = sshll.u32 %s2659_s23, 4  ;;  %s2525_s9 = int_to_ptr.vmem [resolvable:$false] %s2524_s9 }
  0xbd   : > { %s2526_s17 = scalar_lea.vmem %s2525_s9, 256  ;;  %p2527_p6 = scmp.lt.s32.totalorder %s2958_s30, %s2525_s9 }
  0xbe   : > { %p2522_p1 = pnand %p2520_p10, %p2506_p8  ;;  %p2528_p11 = scmp.lt.s32.totalorder %s2526_s17, %s2519_s6 }
  0xc0   : > { %p2523_p9 = pneg %p2522_p1  ;;  %p2529_p12 = por %p2528_p11, %p2527_p6 }
  0xc2   : > { %p2530_p13 = pnand %p2529_p12, %p2523_p9 }
  0xc4   : > { %2533 = shalt.err (!%p2530_p13)
}
  0xc5   : > { %2176 = dma.hbm_to_vmem [thread:$0]  (!%p2954_p4), %s2952_s26, 128, %s2958_s30, %s495_s16  }
  0xc6   : > { %s3249_s3 = sshll.u32 %s2941_s14, 4  ;;  %s512_s23 = sand.u32 1, %s2646_s21  }
  0xc7   : > { %s516_s27 = scalar_lea.vmem [#allocation5], %s3249_s3  ;;  %s2018_s9 = sshll.u32 %s2646_s21, 8 }
  0xc8   : > { %s523_s10 = sshll.u32 %s516_s27, 4  ;;  %s2996_s0 = scalar_lea.hbm %s3204_s1, %s2018_s9  ;;  %s2990_s10 = int_to_ptr.vmem [resolvable:$true] %s523_s10 }
  0xc9   : > { %s2998_s4 = scalar_lea.sflag [#allocation6], %s512_s23  ;;  %s2534_s11 = scalar_lea.hbm %s2996_s0, 256 }
  0xca   : > { %p2535_p6 = scmp.ne.s32.totalorder %s2996_s0, %s2534_s11  ;;  %s2539_s30 = scalar_lea.hbm %s3204_s1, 512 }
  0xcb   : > { %p2540_p0 = scmp.lt.u32.totalorder %s2996_s0, %s3204_s1  ;;  %p2541_p5 = scmp.lt.u32.totalorder %s2539_s30, %s2534_s11 }
  0xcc   : > { %p2537_p9 = pnand %p2535_p6, %p2506_p8  ;;  %p2543_p10 = scmp.lt.u32.totalorder %s2534_s11, %s2996_s0 }
  0xcd   : > { %p2542_p7 = por %p2541_p5, %p2540_p0 }
  0xce   : > { %p2538_p3 = pneg %p2537_p9 }
  0xcf   : > { %p2544_p1 = por %p2543_p10, %p2542_p7 }
  0xd1   : > { %p2545_p11 = pnand %p2544_p1, %p2538_p3 }
  0xd3   : > { %2548 = shalt.err (!%p2545_p11)
}
  0xd4   : > { %s2549_s27 = scalar_lea.vmem %s2990_s10, 256  ;;  %s2660_s23 = smov [#allocation5]  }
  0xd5   : > { %p2550_p12 = scmp.ne.s32.totalorder %s2990_s10, %s2549_s27  ;;  %s2554_s9 = sshll.u32 %s2660_s23, 4  ;;  %s2555_s9 = int_to_ptr.vmem [resolvable:$false] %s2554_s9 }
  0xd6   : > { %s2556_s6 = scalar_lea.vmem %s2555_s9, 512  ;;  %p2557_p9 = scmp.lt.s32.totalorder %s2990_s10, %s2555_s9 }
  0xd7   : > { %p2552_p13 = pnand %p2550_p12, %p2506_p8  ;;  %p2558_p0 = scmp.lt.s32.totalorder %s2556_s6, %s2549_s27 }
  0xd9   : > { %p2553_p6 = pneg %p2552_p13  ;;  %p2559_p5 = por %p2558_p0, %p2557_p9 }
  0xdb   : > { %p2560_p7 = pnand %p2559_p5, %p2553_p6 }
  0xdd   : > { %2563 = shalt.err (!%p2560_p7)
}
  0xde   : > { %s3250_s11 = smov 8   ;;  %s3251_s17 = smov 128  }
  0xdf   : > { %2179 = dma.hbm_to_vmem [thread:$0]  (!%p2954_p4), %s2996_s0, 256, %s2990_s10, %s2998_s4, %s3251_s17, %s3251_s17, %s3250_s11  }
  0xe0   : > { %p3252_p8 = scmp.ne.s32.totalorder %s3236_s25, 0 }
  0xe1   : > { %s3030_s14 = sand.u32 (!%p3252_p8), 1, %s2638_s19  }
  0xe2   : > { %535 = sbr.rel (%p3252_p8) target bundleno = 2534 (0x9e6), region = 80  ;;  %s1916_s26 = sshll.u32 (!%p3252_p8), %s3030_s14, 3 }
  0xe3   : > { %s538_s30 = scalar_lea.sflag (!%p3252_p8), [#allocation3], %s3030_s14  ;;  %s541_s15 = scalar_lea.vmem (!%p3252_p8), [#allocation2], %s1916_s26 }
  0xe9   : > { %2609 = dma.done.wait (%p2931_p2), %s538_s30, 128  }
  0xea   : > { %2611 = vsyncadd (%p2931_p2), %s538_s30, 4294967168  ;;  %s546_s0 = sand.u32 1, %s2766_s24   ;;  %s1917_s4 = sshll.u32 %s3030_s14, 4 }
  0xeb   : > { %s547_s25 = scalar_lea.sflag [#allocation6], %s546_s0  ;;  %s550_s10 = scalar_lea.vmem [#allocation5], %s1917_s4 }
  0xec   : > { %2613 = dma.done.wait (%p2931_p2), %s547_s25, 256  }
  0xed   : > { %2615 = vsyncadd (%p2931_p2), %s547_s25, 4294967040  ;;  %p3253_p4 = scmp.eq.s32.totalorder %s2766_s24, 0 }
  0xef   : > { %2617 = dma.done.wait (%p3253_p4), [#allocation6], 2048   ;;  %p3254_p3 = pmov %p3253_p4 }
  0xf1   : > { %2619 = vsyncadd (%p3254_p3), [#allocation6], 4294965248  ;;  %p3255_p10 = pmov %p3254_p3 }
  0xf2   : > { %p3256_p1 = pmov %p3254_p3 }
  0xf3   : > { %2621 = dma.done.wait (%p3255_p10), [#allocation9], 6144  }
  0xf4   : > { %2623 = vsyncadd (%p3256_p1), [#allocation9], 4294961152  ;;  %p3257_p11 = pmov %p3256_p1 }
  0xf5   : > { %p3258_p12 = pmov %p3256_p1 }
  0xf6   : > { %2625 = dma.done.wait (%p3257_p11), [#allocation12], 2048  }
  0xf7   : > { %2627 = vsyncadd (%p3258_p12), [#allocation12], 4294965248  ;;  %v624_v0 = vld [vmem:[%s550_s10] sm:$0xff]  ;;  %v625_v1 = vld [vmem:[%s550_s10 + $0x8] sm:$0xff]  ;;  %v632_v10 = vlaneseq  ;;  %v2661_v46 = vmov 0   ;;  %s3259_s17 = sld [smem:[#allocation25_spill]] }
  0xf8   : > { %v3058_v2 = vld [vmem:[%s541_s15] sm:$0xff]  ;;  %662 = vadd.xlane.f32.xlu0 %v624_v0  ;;  %v2242_v3 = vld [vmem:[#allocation7 + $0x4] ss:$8 sps:$4 sm:$0xff]   ;;  %v2244_v4 = vld [vmem:[#allocation7] ss:$8 sps:$4 sm:$0xff]   ;;  %834 = vmatprep.mubr.bf16.mxu0 %v2661_v46  ;;  %vm2663_vm2 = vmmov 0  }
  0xf9   : > { %628 = vadd.xlane.f32.xlu1 %v3058_v2  ;;  %v2245_v5 = vld [vmem:[#allocation8 + $0x4] ss:$16 sps:$4 sm:$0xff]   ;;  %v2247_v6 = vld [vmem:[#allocation8] ss:$16 sps:$4 sm:$0xff]   ;;  %802 = vmatprep.subr.bf16.mxu0 %v2242_v3  ;;  %v3061_v13 = vand.u32 127, %v632_v10  ;;  %vm1207_vm3 = vcmask 130048  }
  0xfa   : > { %v2248_v7 = vld [vmem:[#allocation7 + $0x14] ss:$8 sps:$4 sm:$0xff]   ;;  %v2250_v8 = vld [vmem:[#allocation7 + $0x10] ss:$8 sps:$4 sm:$0xff]   ;;  %1035 = vmatprep.subr.bf16.mxu1 %v2245_v5  ;;  %803 = vmatpush1.bf16.msra.mxu0 %v2244_v4  ;;  %v2254_v28 = vld [vmem:[#allocation7 + $0x24] ss:$8 sps:$4 sm:$0xff]  }
  0xfb   : > { %v2251_v9 = vld [vmem:[#allocation8 + $0x24] ss:$16 sps:$4 sm:$0xff]   ;;  %1036 = vmatpush1.bf16.msra.mxu1 %v2247_v6  ;;  %804 = vmatprep.subr.bf16.mxu0 %v2248_v7  ;;  %vm670_vm0 = vcmp.lt.s32.totalorder %v3061_v13, 16  ;;  %vm634_vm1 = vcmp.lt.s32.totalorder %v3061_v13, 32  ;;  %v2253_v27 = vld [vmem:[#allocation8 + $0x20] ss:$16 sps:$4 sm:$0xff]  }
  0xfc   : > { %664 = vadd.xlane.f32.xlu0 %v625_v1  ;;  %1037 = vmatprep.subr.bf16.mxu1 %v2251_v9  ;;  %v2256_v29 = vld [vmem:[#allocation7 + $0x20] ss:$8 sps:$4 sm:$0xff]   ;;  %v2257_v30 = vld [vmem:[#allocation8 + $0x44] ss:$16 sps:$4 sm:$0xff]   ;;  %v2262_v33 = vld [vmem:[#allocation7 + $0x30] ss:$8 sps:$4 sm:$0xff]  }
  0xfd   : > { %v2259_v31 = vld [vmem:[#allocation8 + $0x40] ss:$16 sps:$4 sm:$0xff]   ;;  %v2260_v32 = vld [vmem:[#allocation7 + $0x34] ss:$8 sps:$4 sm:$0xff]   ;;  %v2266_v36 = vld [vmem:[#allocation7 + $0x44] ss:$8 sps:$4 sm:$0xff]   ;;  %1067 = vmatprep.mubr.bf16.mxu1 %v2661_v46 }
  0xfe   : > { %805 = vmatpush1.bf16.msra.mxu0 %v2250_v8  ;;  %v2263_v34 = vld [vmem:[#allocation8 + $0x64] ss:$16 sps:$4 sm:$0xff]   ;;  %v2265_v35 = vld [vmem:[#allocation8 + $0x60] ss:$16 sps:$4 sm:$0xff]   ;;  %v2292_v53 = vld [vmem:[#allocation8 + $0xc] ss:$16 sps:$4 sm:$0xff]  }
  0xff   : > { %1038 = vmatpush1.bf16.msra.mxu1 %v2253_v27  ;;  %806 = vmatprep.subr.bf16.mxu0 %v2254_v28  ;;  %v2268_v37 = vld [vmem:[#allocation7 + $0x40] ss:$8 sps:$4 sm:$0xff]   ;;  %v2269_v38 = vld [vmem:[#allocation8 + $0x84] ss:$16 sps:$4 sm:$0xff]   ;;  %v2274_v42 = vld [vmem:[#allocation7 + $0x50] ss:$8 sps:$4 sm:$0xff]  }
 0x100   : > { %1039 = vmatprep.subr.bf16.mxu1 %v2257_v30  ;;  %v2271_v39 = vld [vmem:[#allocation8 + $0x80] ss:$16 sps:$4 sm:$0xff]   ;;  %v2272_v40 = vld [vmem:[#allocation7 + $0x54] ss:$8 sps:$4 sm:$0xff]   ;;  %v2278_v44 = vld [vmem:[#allocation7 + $0x64] ss:$8 sps:$4 sm:$0xff]  }
 0x101   : > { %v2275_v41 = vld [vmem:[#allocation8 + $0xa4] ss:$16 sps:$4 sm:$0xff]   ;;  %v2277_v43 = vld [vmem:[#allocation8 + $0xa0] ss:$16 sps:$4 sm:$0xff]   ;;  %v2302_v27 = vld [vmem:[#allocation8 + $0x88] ss:$16 sps:$4 sm:$0xff]  }
 0x102   : > { %807 = vmatpush1.bf16.msra.mxu0 %v2256_v29  ;;  %v2281_v45 = vld [vmem:[#allocation8 + $0xc4] ss:$16 sps:$4 sm:$0xff]   ;;  %v2280_v47 = vld [vmem:[#allocation7 + $0x60] ss:$8 sps:$4 sm:$0xff]   ;;  %v2286_v51 = vld [vmem:[#allocation7 + $0x70] ss:$8 sps:$4 sm:$0xff]  }
 0x103   : > { %1040 = vmatpush1.bf16.msra.mxu1 %v2259_v31  ;;  %808 = vmatprep.subr.bf16.mxu0 %v2260_v32  ;;  %v2283_v48 = vld [vmem:[#allocation8 + $0xc0] ss:$16 sps:$4 sm:$0xff]   ;;  %v2284_v49 = vld [vmem:[#allocation7 + $0x74] ss:$8 sps:$4 sm:$0xff]   ;;  %v2305_v29 = vld [vmem:[#allocation8 + $0xa8] ss:$16 sps:$4 sm:$0xff]  }
 0x104   : > { %1041 = vmatprep.subr.bf16.mxu1 %v2263_v34  ;;  %v2287_v50 = vld [vmem:[#allocation8 + $0xe4] ss:$16 sps:$4 sm:$0xff]   ;;  %v2289_v52 = vld [vmem:[#allocation8 + $0xe0] ss:$16 sps:$4 sm:$0xff]   ;;  %v2307_v28 = vld [vmem:[#allocation8 + $0xac] ss:$16 sps:$4 sm:$0xff]  }
 0x105   : > { %v1924_v5 = vld [vmem:[%s3208_s5] ss:$0 sm:$0xff]  ;;  %v2310_v30 = vld [vmem:[#allocation8 + $0xcc] ss:$16 sps:$4 sm:$0xff]   ;;  %v2308_v31 = vld [vmem:[#allocation8 + $0xc8] ss:$16 sps:$4 sm:$0xff]  }
 0x106   : > { %809 = vmatpush1.bf16.msra.mxu0 %v2262_v33  ;;  %v1927_v9 = vld [vmem:[%s3211_s8] ss:$0 sm:$0xff]  ;;  %v2313_v32 = vld [vmem:[#allocation8 + $0xec] ss:$16 sps:$4 sm:$0xff]   ;;  %v2311_v33 = vld [vmem:[#allocation8 + $0xe8] ss:$16 sps:$4 sm:$0xff]  }
 0x107   : > { %1042 = vmatpush1.bf16.msra.mxu1 %v2265_v35  ;;  %810 = vmatprep.subr.bf16.mxu0 %v2266_v36  ;;  %v1925_v10 = vld [vmem:[%s3259_s17] ss:$0 sm:$0xff]  ;;  %v2662_v34 = vmov 0.0   ;;  %v2337_v13 = vld [vmem:[#allocation11 + $0x38] sm:$0xff]   ;;  %s3260_s0 = sld [smem:[#allocation26_spill]]  ;;  %s3261_s10 = sld [smem:[#allocation27_spill]] }
 0x108   : > { %1043 = vmatprep.subr.bf16.mxu1 %v2269_v38  ;;  %s3262_s3 = sld [smem:[#allocation29_spill]]  ;;  %s3263_s9 = sld [smem:[#allocation30_spill]] }
 0x109   : > { %s2015_s6 = sshll.u32 %s2766_s24, 7  ;;  %s621_s11 = scalar_lea.vmem [#allocation14], %s1916_s26 }
 0x10a   : > { %811 = vmatpush1.bf16.msra.mxu0 %v2268_v37  ;;  %s1762_s17 = sshll.u32 %s621_s11, 4  ;;  %s1749_s24 = scalar_lea.sflag [#allocation4], %s3030_s14  ;;  %s3161_s17 = int_to_ptr.vmem [resolvable:$true] %s1762_s17 }
 0x10b   : > { %1044 = vmatpush1.bf16.msra.mxu1 %v2271_v39  ;;  %812 = vmatprep.subr.bf16.mxu0 %v2272_v40  ;;  %s2564_s26 = scalar_lea.vmem %s3161_s17, 128  ;;  %p3265_p13 = scmp.ne.s32.totalorder %s3245_s2, 0 }
 0x10c   : > { %1045 = vmatprep.subr.bf16.mxu1 %v2275_v41  ;;  %p2565_p2 = scmp.ne.s32.totalorder %s3161_s17, %s2564_s26  ;;  %s2664_s25 = smov [#allocation14]  }
 0x10e   : > { %813 = vmatpush1.bf16.msra.mxu0 %v2274_v42  ;;  %p2566_p6 = pnand %p2565_p2, %p3265_p13 }
 0x10f   : > { %1046 = vmatpush1.bf16.msra.mxu1 %v2277_v43  ;;  %814 = vmatprep.subr.bf16.mxu0 %v2278_v44 }
 0x110   : > { %1047 = vmatprep.subr.bf16.mxu1 %v2281_v45  ;;  %p2567_p9 = pneg %p2566_p6 }
 0x112   : > { %815 = vmatpush1.bf16.msra.mxu0 %v2280_v47 }
 0x113   : > { %1048 = vmatpush1.bf16.msra.mxu1 %v2283_v48  ;;  %816 = vmatprep.subr.bf16.mxu0 %v2284_v49 }
 0x114   : > { %1049 = vmatprep.subr.bf16.mxu1 %v2287_v50 }
 0x116   : > { %817 = vmatpush1.bf16.msra.mxu0 %v2286_v51 }
 0x117   : > { %1050 = vmatpush1.bf16.msra.mxu1 %v2289_v52  ;;  %1078 = vmatprep.subr.bf16.mxu0 %v2292_v53 }
 0x118   : > { %2067 = vmatprep.subr.bf16.mxu1 %v2662_v34 }
 0x185   : > { %v663_v11 = vpop.xlane.xlu0 %662 }
 0x186   : > { %v629_v12 = vpop.xlane.xlu1 %628  ;;  %v666_v14 = vmul.f32 0.0625, %v663_v11 }
 0x187   : > { %v630_v15 = vmul.f32 0.03125, %v629_v12 }
 0x188   : > { %v3063_v16 = vsub.f32 %v624_v0, %v666_v14 }
 0x189   : > { %v3066_v17 = vsub.f32 %v3058_v2, %v630_v15  ;;  %v665_v18 = vpop.xlane.xlu0 %664 }
 0x18a   : > { %v667_v19 = vmul.f32 0.0625, %v665_v18  ;;  %v671_v20 = vmul.f32 %v3063_v16, %v3063_v16  ;;  %v2290_v18 = vld [vmem:[#allocation8 + $0x8] ss:$16 sps:$4 sm:$0xff]  }
 0x18b   : > { %v635_v21 = vmul.f32 %v3066_v17, %v3066_v17 }
 0x18c   : > { %v3074_v22 = vsub.f32 %v625_v1, %v667_v19  ;;  %v675_v23 = vsel %vm670_vm0, %v671_v20, 0.0  ;;  %v1926_v1 = vld [vmem:[%s3210_s7] ss:$0 sm:$0xff] }
 0x18d   : > { %677 = vadd.xlane.f32.xlu1 %v675_v23  ;;  %v638_v25 = vsel %vm634_vm1, %v635_v21, 0.0  ;;  %v2295_v21 = vld [vmem:[#allocation8 + $0x2c] ss:$16 sps:$4 sm:$0xff]   ;;  %v2296_v23 = vld [vmem:[#allocation8 + $0x48] ss:$16 sps:$4 sm:$0xff]  }
 0x18e   : > { %v672_v24 = vmul.f32 %v3074_v22, %v3074_v22 }
 0x190   : > { %v676_v26 = vsel %vm670_vm0, %v672_v24, 0.0  ;;  %v2301_v24 = vld [vmem:[#allocation8 + $0x6c] ss:$16 sps:$4 sm:$0xff]  }
 0x191   : > { %679 = vadd.xlane.f32.xlu0 %v676_v26  ;;  %639 = vadd.xlane.f32.xlu1 %v638_v25  ;;  %v2299_v25 = vld [vmem:[#allocation8 + $0x68] ss:$16 sps:$4 sm:$0xff]   ;;  %v2304_v26 = vld [vmem:[#allocation8 + $0x8c] ss:$16 sps:$4 sm:$0xff]  }
 0x21a   : > { %v678_v54 = vpop.xlane.xlu1 %677 }
 0x21b   : > { %v681_v55 = vmul.f32 0.0625, %v678_v54 }
 0x21d   : > { %v683_v56 = vadd.f32 1e-05, %v681_v55 }
 0x21e   : > { %v680_v57 = vpop.xlane.xlu0 %679  ;;  %v640_v58 = vpop.xlane.xlu1 %639 }
 0x21f   : > { %2346 = vrsqrt.f32 %v683_v56  ;;  %v682_v59 = vmul.f32 0.0625, %v680_v57  ;;  %v641_v60 = vmul.f32 0.03125, %v640_v58 }
 0x221   : > { %v684_v61 = vadd.f32 1e-05, %v682_v59  ;;  %v642_v62 = vadd.f32 1e-05, %v641_v60 }
 0x223   : > { %2348 = vrsqrt.f32 %v684_v61 }
 0x224   : > { %2350 = vrsqrt.f32 %v642_v62 }
 0x229   : > { %v2347_v63 = vpop.eup %2346 }
 0x22a   : > { %v687_v0 = vmul.f32 %v2347_v63, %v3063_v16 }
 0x22c   : > { %v695_v7 = vmul.f32 %v1926_v1, %v687_v0 }
 0x22d   : > { %v2349_v3 = vpop.eup %2348 }
 0x22e   : > { %v2351_v4 = vpop.eup %2350  ;;  %v688_v6 = vmul.f32 %v2349_v3, %v3074_v22  ;;  %v703_v14 = vadd.f32 %v1927_v9, %v695_v7  ;;  %v2298_v22 = vld [vmem:[#allocation8 + $0x4c] ss:$16 sps:$4 sm:$0xff]  }
 0x22f   : > { %v644_v8 = vmul.f32 %v2351_v4, %v3066_v17  ;;  %v2293_v17 = vld [vmem:[#allocation8 + $0x28] ss:$16 sps:$4 sm:$0xff]  }
 0x230   : > { %v696_v11 = vmul.f32 %v1926_v1, %v688_v6 }
 0x231   : > { %v651_v12 = vmul.f32 %v1924_v5, %v644_v8 }
 0x232   : > { %v704_v15 = vadd.f32 %v1927_v9, %v696_v11  ;;  %v2315_v11 = vld [vmem:[#allocation10] sm:$0xff]  }
 0x233   : > { %v658_v16 = vadd.f32 %v1925_v10, %v651_v12  ;;  %v2314_v10 = vld [vmem:[#allocation10 + $0x40] sm:$0xff]   ;;  %v2316_v12 = vld [vmem:[#allocation10 + $0x48] sm:$0xff]  }
 0x234   : > { %v705_v19 = vpack.c.bf16 %v704_v15, %v703_v14  ;;  %v2317_v14 = vld [vmem:[#allocation10 + $0x8] sm:$0xff]   ;;  %v2318_v15 = vld [vmem:[#allocation10 + $0x50] sm:$0xff]  }
 0x235   : > { %v659_v20 = vpack.c.bf16 %v658_v16, %v658_v16  ;;  %v2319_v16 = vld [vmem:[#allocation10 + $0x10] sm:$0xff]  }
 0x236   : > { %1068 = vmatmul.mubr.bf16.vlgmr.msra.gmra.mrb[0].mxu1 %v705_v19 }
 0x237   : > { %835 = vmatmul.mubr.bf16.vlgmr.msra.gmra.mrb[0].mxu0 %v659_v20  ;;  %2069 = vmatprep.mubr.msk.bf16.mxu1 %vm2663_vm2, %v2662_v34  ;;  %v2322_v20 = vld [vmem:[#allocation10 + $0x60] sm:$0xff]  }
 0x238   : > { %1079 = vmatpush1.bf16.msra.mxu0 %v2290_v18  ;;  %1110 = vmatprep.mubr.bf16.mxu0 %v2661_v46  ;;  %v2320_v18 = vld [vmem:[#allocation10 + $0x58] sm:$0xff]  }
 0x239   : > { %1080 = vmatprep.subr.bf16.mxu0 %v2295_v21  ;;  %v2323_v21 = vld [vmem:[#allocation10 + $0x20] sm:$0xff]  }
 0x23c   : > { %1081 = vmatpush1.bf16.msra.mxu0 %v2293_v17 }
 0x23d   : > { %1082 = vmatprep.subr.bf16.mxu0 %v2298_v22 }
 0x240   : > { %1083 = vmatpush1.bf16.msra.mxu0 %v2296_v23 }
 0x241   : > { %1084 = vmatprep.subr.bf16.mxu0 %v2301_v24 }
 0x244   : > { %1085 = vmatpush1.bf16.msra.mxu0 %v2299_v25 }
 0x245   : > { %1086 = vmatprep.subr.bf16.mxu0 %v2304_v26 }
 0x248   : > { %1087 = vmatpush1.bf16.msra.mxu0 %v2302_v27 }
 0x249   : > { %1088 = vmatprep.subr.bf16.mxu0 %v2307_v28 }
 0x24c   : > { %1089 = vmatpush1.bf16.msra.mxu0 %v2305_v29  ;;  %v2324_v29 = vld [vmem:[#allocation10 + $0x68] sm:$0xff]  }
 0x24d   : > { %1090 = vmatprep.subr.bf16.mxu0 %v2310_v30  ;;  %v2325_v30 = vld [vmem:[#allocation10 + $0x28] sm:$0xff]  }
 0x250   : > { %1091 = vmatpush1.bf16.msra.mxu0 %v2308_v31  ;;  %v2326_v31 = vld [vmem:[#allocation10 + $0x70] sm:$0xff]  }
 0x251   : > { %1092 = vmatprep.subr.bf16.mxu0 %v2313_v32  ;;  %v2327_v32 = vld [vmem:[#allocation10 + $0x30] sm:$0xff]  }
 0x254   : > { %1093 = vmatpush1.bf16.msra.mxu0 %v2311_v33  ;;  %v2328_v33 = vld [vmem:[#allocation10 + $0x78] sm:$0xff]  }
 0x255   : > { %2027 = vmatprep.subr.bf16.mxu0 %v2314_v10 }
 0x257   : > { %1111 = vmatmul.mubr.bf16.vlgmr.msra.gmra.mrb[4].mxu0 %v705_v19  ;;  %v2321_v19 = vld [vmem:[#allocation10 + $0x18] sm:$0xff]  }
 0x258   : > { %2028 = vmatpush3.bf16.msra.mxu0 %v2315_v11 }
 0x259   : > { %2029 = vmatprep.subr.bf16.mxu0 %v2316_v12 }
 0x25c   : > { %2030 = vmatpush3.bf16.msra.mxu0 %v2317_v14  ;;  %v2341_v14 = vld [vmem:[#allocation13 + $0x18] sm:$0xff]  }
 0x25d   : > { %2031 = vmatprep.subr.bf16.mxu0 %v2318_v15  ;;  %v2342_v15 = vld [vmem:[#allocation13 + $0x20] sm:$0xff]  }
 0x260   : > { %2032 = vmatpush3.bf16.msra.mxu0 %v2319_v16  ;;  %v2343_v16 = vld [vmem:[#allocation13 + $0x28] sm:$0xff]  }
 0x261   : > { %2033 = vmatprep.subr.bf16.mxu0 %v2320_v18  ;;  %v2344_v18 = vld [vmem:[#allocation13 + $0x30] sm:$0xff]  }
 0x264   : > { %2034 = vmatpush3.bf16.msra.mxu0 %v2321_v19  ;;  %v2345_v19 = vld [vmem:[#allocation13 + $0x38] sm:$0xff]  }
 0x265   : > { %2035 = vmatprep.subr.bf16.mxu0 %v2322_v20  ;;  %v1996_v20 = vld [vmem:[%s3262_s3] ss:$0 sm:$0xff] }
 0x268   : > { %2036 = vmatpush3.bf16.msra.mxu0 %v2323_v21 }
 0x269   : > { %2037 = vmatprep.subr.bf16.mxu0 %v2324_v29 }
 0x26c   : > { %2038 = vmatpush3.bf16.msra.mxu0 %v2325_v30  ;;  %v2005_v30 = vld [vmem:[%s3263_s9] ss:$0 sm:$0xff] }
 0x26d   : > { %2039 = vmatprep.subr.bf16.mxu0 %v2326_v31 }
 0x270   : > { %2040 = vmatpush3.bf16.msra.mxu0 %v2327_v32 }
 0x271   : > { %2041 = vmatprep.subr.bf16.mxu0 %v2328_v33 }
 0x309   : > { %v1069_v35 = vpop.f32.mrb[0].mxu1 }
 0x30a   : > { %v836_v36 = vpop.f32.mrb[0].mxu0  ;;  %v1071_v37 = vpop.f32.mrb[1].mxu1 }
 0x30b   : > { %v838_v38 = vpop.f32.mrb[1].mxu0  ;;  %v1073_v39 = vpop.f32.mrb[2].mxu1  ;;  %v1121_v45 = vpack.c.bf16 %v836_v36, %v836_v36 }
 0x30c   : > { %v840_v40 = vpop.f32.mrb[2].mxu0  ;;  %v1123_v41 = vpack.c.bf16 %v1073_v39, %v1069_v35  ;;  %v1075_v42 = vpop.f32.mrb[3].mxu1  ;;  %v1122_v46 = vpack.c.bf16 %v838_v38, %v838_v38  ;;  %v2329_v35 = vld [vmem:[#allocation10 + $0x38] sm:$0xff]  }
 0x30d   : > { %v841_v43 = vpop.f32.mrb[3].mxu0  ;;  %v1124_v44 = vpack.c.bf16 %v1075_v42, %v1071_v37  ;;  %2042 = vmatpush3.bf16.msra.mxu0 %v2329_v35 }
 0x30e   : > { %2068 = vmatpush3.bf16.xpose.msra.mxu1 %v1123_v41  ;;  %2111 = vmatprep.subr.bf16.mxu0 %v2662_v34 }
 0x30f   : > { %2073 = vmatprep.subr.bf16.mxu1 %v2662_v34 }
 0x315   : > { %2070 = vmatmul.mubr.bf16.vlgmr.msra.gmra.mrb[4].mxu1 %v1121_v45 }
 0x316   : > { %2074 = vmatpush3.bf16.xpose.msra.mxu1 %v1124_v44  ;;  %2075 = vmatprep.mubr.msk.bf16.mxu1 %vm2663_vm2, %v2662_v34 }
 0x317   : > { %2079 = vmatprep.subr.bf16.mxu1 %v2662_v34 }
 0x31d   : > { %2076 = vmatmul.mubr.bf16.vlgmr.msra.gmra.mrb[8].mxu1 %v1122_v46 }
 0x31e   : > { %2081 = vmatprep.mubr.msk.bf16.mxu1 %vm2663_vm2, %v2662_v34 }
 0x32a   : > { %v1112_v47 = vpop.f32.mrb[4].mxu0 }
 0x32b   : > { %v1114_v48 = vpop.f32.mrb[5].mxu0 }
 0x32c   : > { %v1116_v49 = vpop.f32.mrb[6].mxu0 }
 0x32d   : > { %v1125_v50 = vpack.c.bf16 %v1116_v49, %v1112_v47  ;;  %v1118_v51 = vpop.f32.mrb[7].mxu0 }
 0x32e   : > { %v1126_v52 = vpack.c.bf16 %v1118_v51, %v1114_v48 }
 0x32f   : > { %2080 = vmatpush3.bf16.msra.mxu1 %v1125_v50 }
 0x330   : > { %2085 = vmatprep.subr.bf16.mxu1 %v2662_v34 }
 0x3e8   : > { %v1161_v53 = vpop.f32.mrb[4].mxu1 }
 0x3e9   : > { %v2071_v54 = vpop.f32.mrb[5].mxu1  ;;  %v1208_v55 = vsel %vm1207_vm3, %v1161_v53, -inf }
 0x3ea   : > { %1209 = vmax.xlane.f32.xlu0 %v1208_v55  ;;  %v1164_v56 = vpop.f32.mrb[6].mxu1 }
 0x3eb   : > { %v2072_v57 = vpop.f32.mrb[7].mxu1 }
 0x3f0   : > { %v1201_v58 = vpop.f32.mrb[8].mxu1 }
 0x3f1   : > { %v2077_v59 = vpop.f32.mrb[9].mxu1  ;;  %v1211_v60 = vsel %vm1207_vm3, %v1201_v58, -inf }
 0x3f2   : > { %1212 = vmax.xlane.f32.xlu1 %v1211_v60  ;;  %v1204_v61 = vpop.f32.mrb[10].mxu1  ;;  %v2333_v59 = vld [vmem:[#allocation11 + $0x18] sm:$0xff]   ;;  %v2334_v60 = vld [vmem:[#allocation11 + $0x20] sm:$0xff]  }
 0x3f3   : > { %v2078_v62 = vpop.f32.mrb[11].mxu1  ;;  %v2335_v61 = vld [vmem:[#allocation11 + $0x28] sm:$0xff]  }
 0x3f4   : > { %v2336_v62 = vld [vmem:[#allocation11 + $0x30] sm:$0xff]  }
 0x477   : > { %v1210_v63 = vpop.xlane.xlu0 %1209 }
 0x478   : > { %v1214_v0 = vsub.f32 %v1161_v53, %v1210_v63  ;;  %v2331_v53 = vld [vmem:[#allocation11 + $0x8] sm:$0xff]   ;;  %v2338_v63 = vld [vmem:[#allocation13] sm:$0xff]  }
 0x47a   : > { %v1216_v1 = vmul.f32 1.442695, %v1214_v0  ;;  %v2339_v0 = vld [vmem:[#allocation13 + $0x8] sm:$0xff]  }
 0x47c   : > { %2352 = vpow2.f32 %v1216_v1  ;;  %v2340_v1 = vld [vmem:[#allocation13 + $0x10] sm:$0xff]  }
 0x47f   : > { %v1213_v3 = vpop.xlane.xlu1 %1212 }
 0x480   : > { %v1215_v4 = vsub.f32 %v1201_v58, %v1213_v3 }
 0x482   : > { %v1218_v5 = vmul.f32 1.442695, %v1215_v4 }
 0x484   : > { %2354 = vpow2.f32 %v1218_v5 }
 0x486   : > { %v2353_v6 = vpop.eup %2352 }
 0x487   : > { %v1220_v7 = vsel %vm1207_vm3, %v2353_v6, 0.0 }
 0x488   : > { %1221 = vadd.xlane.f32.xlu0 %v1220_v7  ;;  %v1994_v7 = vld [vmem:[%s3260_s0] ss:$0 sm:$0xff]  ;;  %s3264_s0 = sld [smem:[#allocation31_spill]] }
 0x48e   : > { %v2355_v8 = vpop.eup %2354  ;;  %s3159_s4 = scalar_lea.hbm %s3264_s0, %s2015_s6 }
 0x48f   : > { %v1223_v9 = vsel %vm1207_vm3, %v2355_v8, 0.0 }
 0x490   : > { %1224 = vadd.xlane.f32.xlu1 %v1223_v9  ;;  %v1995_v9 = vld [vmem:[%s3261_s10] ss:$0 sm:$0xff]  ;;  %s2568_s10 = sshll.u32 %s2664_s25, 4  ;;  %s2569_s10 = int_to_ptr.vmem [resolvable:$false] %s2568_s10 }
 0x491   : > { %s2570_s29 = scalar_lea.vmem %s2569_s10, 256  ;;  %p2571_p0 = scmp.lt.s32.totalorder %s3161_s17, %s2569_s10 }
 0x492   : > { %p2572_p5 = scmp.lt.s32.totalorder %s2570_s29, %s2564_s26 }
 0x494   : > { %p2573_p7 = por %p2572_p5, %p2571_p0 }
 0x496   : > { %p2574_p8 = pnand %p2573_p7, %p2567_p9 }
 0x515   : > { %v1222_v17 = vpop.xlane.xlu0 %1221 }
 0x516   : > { %2356 = vrcp.f32 %v1222_v17 }
 0x51d   : > { %v1225_v22 = vpop.xlane.xlu1 %1224 }
 0x51e   : > { %2358 = vrcp.f32 %v1225_v22 }
 0x520   : > { %v2357_v23 = vpop.eup %2356 }
 0x521   : > { %v1228_v24 = vmul.f32 %v2357_v23, %v2353_v6 }
 0x523   : > { %v1230_v25 = vpack.c.bf16 %v1228_v24, %v1228_v24 }
 0x525   : > { %2082 = vmatmul.mubr.msk.bf16.vlgmr.msra.gmra.mrb[12].mxu1 %vm1207_vm3, %v1230_v25 }
 0x526   : > { %2086 = vmatpush3.bf16.msra.mxu1 %v1126_v52  ;;  %2087 = vmatprep.mubr.msk.bf16.mxu1 %vm2663_vm2, %v2662_v34  ;;  %v2330_v52 = vld [vmem:[#allocation11] sm:$0xff]  }
 0x527   : > { %2091 = vmatprep.subr.bf16.mxu1 %v2662_v34 }
 0x528   : > { %v2359_v26 = vpop.eup %2358 }
 0x529   : > { %v1229_v27 = vmul.f32 %v2359_v26, %v2355_v8 }
 0x52b   : > { %v1231_v28 = vpack.c.bf16 %v1229_v27, %v1229_v27 }
 0x52d   : > { %2088 = vmatmul.mubr.msk.bf16.vlgmr.msra.gmra.mrb[16].mxu1 %vm1207_vm3, %v1231_v28 }
 0x52e   : > { %2107 = vmatprep.mubr.msk.bf16.mxu1 %vm2663_vm2, %v2662_v34  ;;  %2092 = vmatpush3.bf16.msra.mxu1 %v2330_v52 }
 0x52f   : > { %2093 = vmatprep.subr.bf16.mxu1 %v2662_v34 }
 0x532   : > { %2094 = vmatpush3.bf16.msra.mxu1 %v2331_v53 }
 0x533   : > { %2095 = vmatprep.subr.bf16.mxu1 %v2662_v34 }
 0x5f8   : > { %v1269_v36 = vpop.f32.mrb[12].mxu1 }
 0x5f9   : > { %v2083_v37 = vpop.f32.mrb[13].mxu1  ;;  %v1318_v43 = vpack.c.bf16 %v1269_v36, %v1269_v36 }
 0x5fa   : > { %v1272_v38 = vpop.f32.mrb[14].mxu1 }
 0x5fb   : > { %v2084_v39 = vpop.f32.mrb[15].mxu1 }
 0x600   : > { %v1312_v40 = vpop.f32.mrb[16].mxu1 }
 0x601   : > { %v1319_v41 = vpack.c.bf16 %v1312_v40, %v1312_v40  ;;  %v2089_v42 = vpop.f32.mrb[17].mxu1 }
 0x602   : > { %v1315_v44 = vpop.f32.mrb[18].mxu1 }
 0x603   : > { %v2090_v45 = vpop.f32.mrb[19].mxu1  ;;  %1480 = vmatprep.mubr.bf16.mxu0 %v1319_v41 }
 0x604   : > { %1481 = vmatmul.mubr.bf16.vlgmr.msra.gmra.mrb[8].mxu0 %v1318_v43 }
 0x605   : > { %2127 = vmatprep.mubr.msk.bf16.mxu0 %vm2663_vm2, %v2662_v34  ;;  %2112 = vmatpush3.bf16.msra.mxu0 %v2338_v63 }
 0x606   : > { %2113 = vmatprep.subr.bf16.mxu0 %v2662_v34 }
 0x609   : > { %2114 = vmatpush3.bf16.msra.mxu0 %v2339_v0 }
 0x60a   : > { %2115 = vmatprep.subr.bf16.mxu0 %v2662_v34 }
 0x60d   : > { %2116 = vmatpush3.bf16.msra.mxu0 %v2340_v1 }
 0x60e   : > { %2117 = vmatprep.subr.bf16.mxu0 %v2662_v34 }
 0x611   : > { %2118 = vmatpush3.bf16.msra.mxu0 %v2341_v14 }
 0x612   : > { %2119 = vmatprep.subr.bf16.mxu0 %v2662_v34 }
 0x615   : > { %2120 = vmatpush3.bf16.msra.mxu0 %v2342_v15 }
 0x616   : > { %2121 = vmatprep.subr.bf16.mxu0 %v2662_v34 }
 0x619   : > { %2122 = vmatpush3.bf16.msra.mxu0 %v2343_v16 }
 0x61a   : > { %2123 = vmatprep.subr.bf16.mxu0 %v2662_v34 }
 0x61d   : > { %2124 = vmatpush3.bf16.msra.mxu0 %v2344_v18 }
 0x61e   : > { %2125 = vmatprep.subr.bf16.mxu0 %v2662_v34 }
 0x621   : > { %2126 = vmatpush3.bf16.msra.mxu0 %v2345_v19 }
 0x6d7   : > { %v2043_v46 = vpop.f32.mrb[8].mxu0 }
 0x6d8   : > { %v2044_v47 = vpop.f32.mrb[9].mxu0 }
 0x6d9   : > { %v2045_v48 = vadd.f32 %v2044_v47, %v2043_v46  ;;  %v2046_v49 = vpop.f32.mrb[10].mxu0 }
 0x6da   : > { %v2047_v50 = vpop.f32.mrb[11].mxu0 }
 0x6db   : > { %v3120_v51 = vadd.f32 %v2045_v48, %v3058_v2  ;;  %v2332_v2 = vld [vmem:[#allocation11 + $0x10] sm:$0xff]  }
 0x6dc   : > { %2096 = vmatpush3.bf16.msra.mxu1 %v2332_v2 }
 0x6dd   : > { %1491 = vadd.xlane.f32.xlu0 %v3120_v51  ;;  %2097 = vmatprep.subr.bf16.mxu1 %v2662_v34 }
 0x6e0   : > { %2098 = vmatpush3.bf16.msra.mxu1 %v2333_v59 }
 0x6e1   : > { %2099 = vmatprep.subr.bf16.mxu1 %v2662_v34 }
 0x6e4   : > { %2100 = vmatpush3.bf16.msra.mxu1 %v2334_v60 }
 0x6e5   : > { %2101 = vmatprep.subr.bf16.mxu1 %v2662_v34 }
 0x6e8   : > { %2102 = vmatpush3.bf16.msra.mxu1 %v2335_v61 }
 0x6e9   : > { %2103 = vmatprep.subr.bf16.mxu1 %v2662_v34 }
 0x6ec   : > { %2104 = vmatpush3.bf16.msra.mxu1 %v2336_v62 }
 0x6ed   : > { %2105 = vmatprep.subr.bf16.mxu1 %v2662_v34 }
 0x6f0   : > { %2106 = vmatpush3.bf16.msra.mxu1 %v2337_v13 }
 0x76a   : > { %v1492_v54 = vpop.xlane.xlu0 %1491 }
 0x76b   : > { %v1493_v55 = vmul.f32 0.03125, %v1492_v54 }
 0x76d   : > { %v1494_v56 = vsub.f32 %v3120_v51, %v1493_v55 }
 0x76f   : > { %v1495_v57 = vmul.f32 %v1494_v56, %v1494_v56 }
 0x771   : > { %v1496_v58 = vsel %vm634_vm1, %v1495_v57, 0.0 }
 0x772   : > { %1497 = vadd.xlane.f32.xlu1 %v1496_v58 }
 0x7ff   : > { %v1498_v3 = vpop.xlane.xlu1 %1497 }
 0x800   : > { %v1499_v4 = vmul.f32 0.03125, %v1498_v3 }
 0x802   : > { %v1500_v5 = vadd.f32 1e-05, %v1499_v4 }
 0x804   : > { %2360 = vrsqrt.f32 %v1500_v5 }
 0x80e   : > { %v2361_v6 = vpop.eup %2360 }
 0x80f   : > { %v1502_v8 = vmul.f32 %v2361_v6, %v1494_v56 }
 0x811   : > { %v1509_v10 = vmul.f32 %v1994_v7, %v1502_v8 }
 0x813   : > { %v1516_v11 = vadd.f32 %v1995_v9, %v1509_v10 }
 0x815   : > { %v1517_v12 = vpack.c.bf16 %v1516_v11, %v1516_v11 }
 0x817   : > { %2108 = vmatmul.mubr.bf16.vlgmr.msra.gmra.mrb[20].mxu1 %v1517_v12 }
 0x8ea   : > { %v1623_v21 = vpop.f32.mrb[20].mxu1 }
 0x8eb   : > { %v1624_v17 = vadd.f32 %v1996_v20, %v1623_v21  ;;  %v2109_v22 = vpop.f32.mrb[21].mxu1 }
 0x8ec   : > { %v1626_v23 = vpop.f32.mrb[22].mxu1 }
 0x8ed   : > { %v1630_v24 = vmul.f32 0.70710677, %v1624_v17  ;;  %v2110_v25 = vpop.f32.mrb[23].mxu1  ;;  %v1629_v27 = vmul.f32 0.5, %v1624_v17 }
 0x8ef   : > { %2362 = verf.f32 %v1630_v24 }
 0x8f9   : > { %v2363_v26 = vpop.eup %2362 }
 0x8fa   : > { %v1632_v28 = vadd.f32 1.0, %v2363_v26 }
 0x8fc   : > { %v1633_v29 = vmul.f32 %v1632_v28, %v1629_v27 }
 0x8fe   : > { %v1634_v34 = vpack.c.bf16 %v1633_v29, %v1633_v29 }
 0x900   : > { %2128 = vmatmul.mubr.bf16.vlgmr.msra.gmra.mrb[12].mxu0 %v1634_v34 }
 0x9d3   : > { %v1740_v31 = vpop.f32.mrb[12].mxu0 }
 0x9d4   : > { %v1741_v32 = vadd.f32 %v2005_v30, %v1740_v31  ;;  %v2129_v33 = vpop.f32.mrb[13].mxu0 }
 0x9d5   : > { %v1743_v35 = vpop.f32.mrb[14].mxu0 }
 0x9d6   : > { %v1746_v36 = vadd.f32 %v1741_v32, %v3120_v51  ;;  %v2130_v37 = vpop.f32.mrb[15].mxu0 }
 0x9d8   : > { %1747 = vst [vmem:[%s621_s11] sm:$0xff] %v1746_v36 }
 0x9d9   : > { %2577 = shalt.err (!%p2574_p8)
}
 0x9da   : > { %s2578_s14 = scalar_lea.hbm %s3159_s4, 128  ;;  %s2582_s27 = scalar_lea.hbm %s3264_s0, 256 }
 0x9db   : > { %p2579_p4 = scmp.ne.s32.totalorder %s3159_s4, %s2578_s14  ;;  %p2583_p1 = scmp.lt.u32.totalorder %s3159_s4, %s3264_s0 }
 0x9dc   : > { %p2584_p11 = scmp.lt.u32.totalorder %s2582_s27, %s2578_s14  ;;  %p2586_p2 = scmp.lt.u32.totalorder %s2578_s14, %s3159_s4 }
 0x9dd   : > { %p2580_p3 = pnand %p2579_p4, %p3265_p13 }
 0x9de   : > { %p2585_p12 = por %p2584_p11, %p2583_p1 }
 0x9df   : > { %p2581_p10 = pneg %p2580_p3 }
 0x9e0   : > { %p2587_p6 = por %p2586_p2, %p2585_p12 }
 0x9e2   : > { %p2588_p9 = pnand %p2587_p6, %p2581_p10 }
 0x9e4   : > { %2591 = shalt.err (!%p2588_p9)
}
 0x9e5   : > { %2155 = dma.vmem_to_hbm [thread:$0]  (%p3265_p13), %s3161_s17, 128, %s3159_s4, %s1749_s24  }
 0x9e6 PF: > { %s1774_s6 = sand.u32 1, %s2634_s18   ;;  %p3266_p0 = scmp.ne.s32.totalorder %s3246_s12, 0 }
 0x9e7   : > { %p3267_p5 = scmp.ge.s32.totalorder %s2646_s21, 2  ;;  %s1775_s11 = scalar_lea.sflag [#allocation4], %s1774_s6 }
 0x9e9   : > { %p2181_p7 = pnand %p3267_p5, %p3266_p0 }
 0x9eb   : > { %2629 = dma.done.wait (!%p2181_p7), %s1775_s11, 128  }
 0x9ec   : > { %2631 = vsyncadd (!%p2181_p7), %s1775_s11, 4294967168  ;;  %p33_p8 = scmp.ge.s32.totalorder %s2915_s28, 4   ;;  %s3268_s18 = smov %s2638_s19 }
 0x9ed   : > { %s3269_s19 = smov %s2642_s20  ;;  %s3270_s20 = smov %s2927_s22 }
 0x9ee   : > { %s3271_s21 = smov %s2915_s28  ;;  %35 = sbr.rel (!%p33_p8) target bundleno = 21 (0x15), region = 158 }
 0x9f5   :  { %1780 = vsyncpa [#allocation3], 1 }
 0x9f6   :  { %1782 = vsyncpa [#allocation3 + $0x1], 1 }
 0x9f7   :  { %1783 = vsyncpa [#allocation6], 1 }
 0x9f8   :  { %1785 = vsyncpa [#allocation6 + $0x1], 1 }
 0x9f9   :  { %1786 = vsyncpa [#allocation9], 1 }
 0x9fa   :  { %1787 = vsyncpa [#allocation12], 1 }
 0x9fb   :  { %1788 = vsyncpa [#allocation4], 1 }
 0x9fc   :  { %1790 = vsyncpa [#allocation4 + $0x1], 1 }

</bundles_post_ra>
